<compile_context>
chip_gen: v7x
topology: tpu7x:2x2x1
jax: 0.10.0
libtpu: 0.0.40
codegen_flags: <defaults>
</compile_context>

<pallas_src>
import functools

import jax
import jax.numpy as jnp
from jax import lax
from jax.experimental import pallas as pl
from jax.experimental.pallas import tpu as pltpu

ENC_DIM = 32                      # cfgs.encoder.embed_dim
DIM_DICT = 16                     # cfgs.emb_dim
SIZE_DICT = 64                    # cfgs.codebook
MLP_LAYERS = 2                    # cfgs.MLPLayers
N_GROUPS = ENC_DIM // DIM_DICT    # groups of dim_dict per token
LN_EPS = 1e-5                     # torch.nn.LayerNorm default eps


def _ffn_layer(h, w, b, gamma, beta):
    """Linear + ReLU + LayerNorm (torch defaults), all in f32."""
    y = jnp.dot(h, w, preferred_element_type=jnp.float32) + b
    y = jnp.maximum(y, 0.0)
    mu = jnp.mean(y, axis=-1, keepdims=True)
    var = jnp.mean((y - mu) ** 2, axis=-1, keepdims=True)
    yn = (y - mu) * lax.rsqrt(var + LN_EPS)
    return yn * gamma + beta


# ---------------------------------------------------------------------------
# Fused forward kernel: encoder MLP -> Gaussian VQ (deterministic) -> decoder MLP
# ---------------------------------------------------------------------------
def sqvae_fused_kernel(
    x_ref,                                    # (rows, D)
    ew_ref, eb_ref, eg_ref, ebt_ref,          # encoder (L,D,D)/(L,1,D)*3
    dw_ref, db_ref, dg_ref, dbt_ref,          # decoder (L,D,D)/(L,1,D)*3
    cb_ref,                                   # (K, DD)
    logq_ref,                                 # (1,1) SMEM scalar
    xrec_ref, zenc_ref, zdec_ref,             # (rows, D) outputs
    loss_ref, perp_ref,                       # (1,1) outputs
    kld_acc, sqerr_acc, counts_acc,           # VMEM scratch accumulators (f32)
    *, bs, n_codes,
):
    i = pl.program_id(0)
    nt = pl.num_programs(0)

    @pl.when(i == 0)
    def _():
        kld_acc[...] = jnp.zeros_like(kld_acc)
        sqerr_acc[...] = jnp.zeros_like(sqerr_acc)
        counts_acc[...] = jnp.zeros_like(counts_acc)

    # ----- encoder MLP (unrolled over the stacked, VMEM-resident weights) -----
    h = x_ref[...]
    for l in range(MLP_LAYERS):
        h = _ffn_layer(h, ew_ref[l], eb_ref[l], eg_ref[l], ebt_ref[l])
    zenc_ref[...] = h                                   # z_from_encoder latent

    # ----- Gaussian VQ, param_var_q == 'gaussian_1', eval / deterministic -----
    # param_q = exp(log_var_q=0) + exp(log_param_q_scalar); weight = 0.5/param_q
    log_q = logq_ref[0, 0]
    param_q = 1.0 + jnp.exp(log_q)
    w = 0.5 * (1.0 / jnp.maximum(param_q, 1e-10))

    cb = cb_ref[...]                                    # (K, DD)
    rows = x_ref.shape[0]
    K = cb.shape[0]

    # |c|^2 as a (1, K) row without transposing the codebook (ones-row matmul).
    ones_row = jnp.ones((1, DIM_DICT), jnp.float32)
    cb_sq = lax.dot_general(ones_row, cb * cb,
                            (((1,), (1,)), ((), ())),
                            preferred_element_type=jnp.float32)       # (1, K)

    iota_k = lax.broadcasted_iota(jnp.int32, (rows, K), 1)

    kld_part = jnp.zeros((1, 1), jnp.float32)
    sq_part = jnp.zeros((1, 1), jnp.float32)
    cnt_part = jnp.zeros((1, K), jnp.float32)
    zq_parts = []

    for g in range(N_GROUPS):
        zg = h[:, g * DIM_DICT:(g + 1) * DIM_DICT]       # (rows, DD)

        # distances = |z|^2 + |c|^2 - 2 z.c   (contraction on dim 1, no cb.T)
        cross = lax.dot_general(zg, cb, (((1,), (1,)), ((), ())),
                                preferred_element_type=jnp.float32)   # (rows, K)
        z_sq = jnp.sum(zg * zg, axis=1, keepdims=True)                # (rows, 1)
        logit = -w * (z_sq + cb_sq - 2.0 * cross)                     # (rows, K)

        # softmax statistics (no full prob/logprob temporaries needed):
        # sum_k p_k log p_k = sum_k(e*sh)/s - log(s)   per row
        m = jnp.max(logit, axis=-1, keepdims=True)
        sh = logit - m
        e = jnp.exp(sh)
        s = jnp.sum(e, axis=-1, keepdims=True)
        inv_s = pl.reciprocal(s, approx=False)   # exact (approx=True also OK)
        log_s = jnp.log(s)
        kld_rows = jnp.sum(e * sh, axis=-1, keepdims=True) * inv_s - log_s
        kld_part = kld_part + jnp.sum(kld_rows, keepdims=True)        # (1,1)

        # deterministic hard assignment (argmax, first index on ties)
        cand = jnp.where(logit >= m, iota_k, K)
        first_idx = jnp.min(cand, axis=-1, keepdims=True)             # (rows, 1)
        onehot = (iota_k == first_idx).astype(jnp.float32)            # (rows, K)

        zq = jnp.dot(onehot, cb, preferred_element_type=jnp.float32)  # (rows, DD)
        zq_parts.append(zq)

        sq_part = sq_part + jnp.sum((zg - zq) ** 2, keepdims=True)
        cnt_part = cnt_part + jnp.sum(onehot, axis=0, keepdims=True)

    # pack groups back into the (rows, D) decoder layout with one full store
    z_dec = jnp.concatenate(zq_parts, axis=-1)                        # (rows, D)
    zdec_ref[...] = z_dec

    kld_acc[...] = kld_acc[...] + kld_part
    sqerr_acc[...] = sqerr_acc[...] + sq_part
    counts_acc[...] = counts_acc[...] + cnt_part

    # ----- decoder MLP -----
    h = z_dec
    for l in range(MLP_LAYERS):
        h = _ffn_layer(h, dw_ref[l], db_ref[l], dg_ref[l], dbt_ref[l])
    xrec_ref[...] = h

    # ----- finalize scalar outputs on the last row tile -----
    @pl.when(i == nt - 1)
    def _():
        # loss = kld_discrete + kld_continuous
        #      = sum(p*logp)/bs + sum((z - zq)^2)*w/bs
        loss_ref[...] = (kld_acc[...] + sqerr_acc[...] * w) / bs
        avg_probs = counts_acc[...] / jnp.float32(n_codes)            # (1, K)
        ent = jnp.sum(avg_probs * jnp.log(avg_probs + 1e-7), keepdims=True)
        perp_ref[...] = jnp.exp(-ent)

    # TODO(synk): training path (gumbel_softmax_sample) and the stochastic
    # Categorical-sampling eval branch are not implemented (deterministic only).


# ---------------------------------------------------------------------------
# SQVAE.forward (eval path) wrapper — a single pallas_call
# ---------------------------------------------------------------------------
def sqvae_forward(x, params, *, row_tile=None):
    bs, seq, d = x.shape
    assert d == ENC_DIM
    M = bs * seq
    if row_tile is None:
        row_tile = M if M <= 512 else 512        # keep tiles well inside v7x VMEM
    assert M % row_tile == 0, "row count must be divisible by the row tile"
    nt = M // row_tile

    x2d = x.reshape(M, d)
    enc, dec = params["encoder"], params["decoder"]
    logq = jnp.asarray(params["log_param_q_scalar"], jnp.float32).reshape(1, 1)

    row_spec = pl.BlockSpec((row_tile, d), lambda i: (i, 0))
    def resident3(shape):                        # stacked weights: stay in VMEM
        return pl.BlockSpec(shape, lambda i: (0, 0, 0))
    cb_spec = pl.BlockSpec((SIZE_DICT, DIM_DICT), lambda i: (0, 0))
    smem_spec = pl.BlockSpec(memory_space=pltpu.MemorySpace.SMEM)
    scalar_out = pl.BlockSpec((1, 1), lambda i: (0, 0))

    kernel = functools.partial(sqvae_fused_kernel, bs=bs, n_codes=M * N_GROUPS)

    out = pl.pallas_call(
        kernel,
        out_shape=(
            jax.ShapeDtypeStruct((M, d), jnp.float32),     # x_reconst
            jax.ShapeDtypeStruct((M, d), jnp.float32),     # z_from_encoder
            jax.ShapeDtypeStruct((M, d), jnp.float32),     # z_to_decoder
            jax.ShapeDtypeStruct((1, 1), jnp.float32),     # loss_latent
            jax.ShapeDtypeStruct((1, 1), jnp.float32),     # perplexity
        ),
        grid_spec=pltpu.PrefetchScalarGridSpec(
            num_scalar_prefetch=0,
            grid=(nt,),
            in_specs=[
                row_spec,
                resident3((MLP_LAYERS, d, d)), resident3((MLP_LAYERS, 1, d)),
                resident3((MLP_LAYERS, 1, d)), resident3((MLP_LAYERS, 1, d)),
                resident3((MLP_LAYERS, d, d)), resident3((MLP_LAYERS, 1, d)),
                resident3((MLP_LAYERS, 1, d)), resident3((MLP_LAYERS, 1, d)),
                cb_spec,
                smem_spec,
            ],
            out_specs=(row_spec, row_spec, row_spec, scalar_out, scalar_out),
            scratch_shapes=[
                pltpu.VMEM((1, 1), jnp.float32),           # kld accumulator
                pltpu.VMEM((1, 1), jnp.float32),           # squared-error accum
                pltpu.VMEM((1, SIZE_DICT), jnp.float32),   # code-count accum
            ],
        ),
        compiler_params=pltpu.CompilerParams(
            # loss/perplexity accumulation makes the row axis order-dependent
            dimension_semantics=("arbitrary",)),
    )(x2d, enc["w"], enc["b"], enc["g"], enc["beta"],
      dec["w"], dec["b"], dec["g"], dec["beta"],
      params["codebook"], logq)

    xrec2d, zenc2d, zdec2d, loss, perp = out
    latents = dict(z_from_encoder=zenc2d.reshape(bs, seq, d),
                   z_to_decoder=zdec2d.reshape(bs, seq, d))
    return xrec2d.reshape(bs, seq, d), loss[0, 0], (perp[0, 0], latents)


# ---------------------------------------------------------------------------
# Deterministic parameter init + demo
# ---------------------------------------------------------------------------
def make_mlp_stack(key, n_layers):
    ws, bs_, gs, betas = [], [], [], []
    for k in jax.random.split(key, n_layers):
        kw, kb = jax.random.split(k)
        ws.append(jax.random.normal(kw, (ENC_DIM, ENC_DIM), jnp.float32)
                  / jnp.sqrt(ENC_DIM))
        bs_.append(jax.random.normal(kb, (1, ENC_DIM), jnp.float32) * 0.01)
        gs.append(jnp.ones((1, ENC_DIM), jnp.float32))       # LayerNorm weight
        betas.append(jnp.zeros((1, ENC_DIM), jnp.float32))   # LayerNorm bias
    return dict(w=jnp.stack(ws), b=jnp.stack(bs_),
                g=jnp.stack(gs), beta=jnp.stack(betas))


if __name__ == "__main__":
    BS, SEQ = 2, 8
    key = jax.random.PRNGKey(0)
    k_enc, k_dec, k_cb, k_x = jax.random.split(key, 4)

    params = {
        "encoder": make_mlp_stack(k_enc, MLP_LAYERS),
        "decoder": make_mlp_stack(k_dec, MLP_LAYERS),
        "codebook": jax.random.normal(k_cb, (SIZE_DICT, DIM_DICT), jnp.float32),
        "log_param_q_scalar": jnp.float32(0.0),   # cfgs.log_param_q_init
    }
    x = jax.random.normal(k_x, (BS, SEQ, ENC_DIM), jnp.float32)

    x_reconst, loss_latent, (perplexity, latents) = sqvae_forward(x, params)
    jax.block_until_ready((x_reconst, loss_latent, perplexity,
                           latents["z_from_encoder"], latents["z_to_decoder"]))

    assert x_reconst.shape == (BS, SEQ, ENC_DIM)
    assert latents["z_from_encoder"].shape == (BS, SEQ, ENC_DIM)
    assert latents["z_to_decoder"].shape == (BS, SEQ, ENC_DIM)
    assert bool(jnp.isfinite(loss_latent)) and bool(jnp.isfinite(perplexity))
    print("KERNEL_OK")
</pallas_src>

<mosaic_0001>
module attributes {stable_mosaic.version = 11 : i64} {
  func.func @sqvae_fused_kernel(%arg0: i32, %arg1: memref<16x32xf32, #tpu.memory_space<vmem>>, %arg2: memref<2x32x32xf32, #tpu.memory_space<vmem>>, %arg3: memref<2x1x32xf32, #tpu.memory_space<vmem>>, %arg4: memref<2x1x32xf32, #tpu.memory_space<vmem>>, %arg5: memref<2x1x32xf32, #tpu.memory_space<vmem>>, %arg6: memref<2x32x32xf32, #tpu.memory_space<vmem>>, %arg7: memref<2x1x32xf32, #tpu.memory_space<vmem>>, %arg8: memref<2x1x32xf32, #tpu.memory_space<vmem>>, %arg9: memref<2x1x32xf32, #tpu.memory_space<vmem>>, %arg10: memref<64x16xf32, #tpu.memory_space<vmem>>, %arg11: memref<1x1xf32, #tpu.memory_space<smem>>, %arg12: memref<16x32xf32, #tpu.memory_space<vmem>>, %arg13: memref<16x32xf32, #tpu.memory_space<vmem>>, %arg14: memref<16x32xf32, #tpu.memory_space<vmem>>, %arg15: memref<1x1xf32, #tpu.memory_space<vmem>>, %arg16: memref<1x1xf32, #tpu.memory_space<vmem>>, %arg17: memref<1x1xf32, #tpu.memory_space<vmem>>, %arg18: memref<1x1xf32, #tpu.memory_space<vmem>>, %arg19: memref<1x64xf32, #tpu.memory_space<vmem>>) attributes {dimension_semantics = [#tpu.dimension_semantics<arbitrary>], iteration_bounds = array<i64: 1>, scalar_prefetch = 0 : i64, scratch_operands = 3 : i64, tpu.core_type = #tpu.core_type<tc>, window_params = [{transform_indices = @transform_0, window_bounds = array<i64: 16, 32>}, {pipeline_mode = #tpu.pipeline_mode<synchronous>, transform_indices = @transform_1, window_bounds = array<i64: 2, 32, 32>}, {pipeline_mode = #tpu.pipeline_mode<synchronous>, transform_indices = @transform_2, window_bounds = array<i64: 2, 1, 32>}, {pipeline_mode = #tpu.pipeline_mode<synchronous>, transform_indices = @transform_3, window_bounds = array<i64: 2, 1, 32>}, {pipeline_mode = #tpu.pipeline_mode<synchronous>, transform_indices = @transform_4, window_bounds = array<i64: 2, 1, 32>}, {pipeline_mode = #tpu.pipeline_mode<synchronous>, transform_indices = @transform_5, window_bounds = array<i64: 2, 32, 32>}, {pipeline_mode = #tpu.pipeline_mode<synchronous>, transform_indices = @transform_6, window_bounds = array<i64: 2, 1, 32>}, {pipeline_mode = #tpu.pipeline_mode<synchronous>, transform_indices = @transform_7, window_bounds = array<i64: 2, 1, 32>}, {pipeline_mode = #tpu.pipeline_mode<synchronous>, transform_indices = @transform_8, window_bounds = array<i64: 2, 1, 32>}, {pipeline_mode = #tpu.pipeline_mode<synchronous>, transform_indices = @transform_9, window_bounds = array<i64: 64, 16>}, {transform_indices = @transform_10, window_bounds = array<i64: 1, 1>}, {transform_indices = @transform_11, window_bounds = array<i64: 16, 32>}, {transform_indices = @transform_12, window_bounds = array<i64: 16, 32>}, {transform_indices = @transform_13, window_bounds = array<i64: 16, 32>}, {pipeline_mode = #tpu.pipeline_mode<synchronous>, transform_indices = @transform_14, window_bounds = array<i64: 1, 1>}, {pipeline_mode = #tpu.pipeline_mode<synchronous>, transform_indices = @transform_15, window_bounds = array<i64: 1, 1>}]} {
    %c0_i32 = arith.constant 0 : i32
    %0 = arith.cmpi eq, %arg0, %c0_i32 : i32
    %1 = arith.extui %0 : i1 to i32
    %c0_i32_0 = arith.constant 0 : i32
    %2 = arith.cmpi ne, %1, %c0_i32_0 : i32
    scf.if %2 {
      %cst_134 = arith.constant 0.000000e+00 : f32
      %286 = vector.broadcast %cst_134 : f32 to vector<1x1xf32>
      %c0_135 = arith.constant 0 : index
      %c0_136 = arith.constant 0 : index
      %287 = vector.load %arg17[%c0_135, %c0_136] : memref<1x1xf32, #tpu.memory_space<vmem>>, vector<1x1xf32>
      tpu.vector_store %arg17[%c0_135, %c0_136], %286 {strides = array<i32>} : memref<1x1xf32, #tpu.memory_space<vmem>>, vector<1x1xf32>,
      %cst_137 = arith.constant 0.000000e+00 : f32
      %288 = vector.broadcast %cst_137 : f32 to vector<1x1xf32>
      %c0_138 = arith.constant 0 : index
      %c0_139 = arith.constant 0 : index
      %289 = vector.load %arg18[%c0_138, %c0_139] : memref<1x1xf32, #tpu.memory_space<vmem>>, vector<1x1xf32>
      tpu.vector_store %arg18[%c0_138, %c0_139], %288 {strides = array<i32>} : memref<1x1xf32, #tpu.memory_space<vmem>>, vector<1x1xf32>,
      %cst_140 = arith.constant 0.000000e+00 : f32
      %290 = vector.broadcast %cst_140 : f32 to vector<1x64xf32>
      %c0_141 = arith.constant 0 : index
      %c0_142 = arith.constant 0 : index
      %291 = vector.load %arg19[%c0_141, %c0_142] : memref<1x64xf32, #tpu.memory_space<vmem>>, vector<1x64xf32>
      tpu.vector_store %arg19[%c0_141, %c0_142], %290 {strides = array<i32>} : memref<1x64xf32, #tpu.memory_space<vmem>>, vector<1x64xf32>,
    } else {
    }
    %c0 = arith.constant 0 : index
    %c0_1 = arith.constant 0 : index
    %3 = vector.load %arg1[%c0, %c0_1] : memref<16x32xf32, #tpu.memory_space<vmem>>, vector<16x32xf32>
    %c0_2 = arith.constant 0 : index
    %c0_3 = arith.constant 0 : index
    %c0_4 = arith.constant 0 : index
    %4 = vector.load %arg2[%c0_2, %c0_3, %c0_4] : memref<2x32x32xf32, #tpu.memory_space<vmem>>, vector<1x32x32xf32>
    %5 = vector.shape_cast %4 : vector<1x32x32xf32> to vector<32x32xf32>
    %c0_5 = arith.constant 0 : index
    %c0_6 = arith.constant 0 : index
    %c0_7 = arith.constant 0 : index
    %6 = vector.load %arg3[%c0_5, %c0_6, %c0_7] : memref<2x1x32xf32, #tpu.memory_space<vmem>>, vector<1x1x32xf32>
    %7 = vector.shape_cast %6 : vector<1x1x32xf32> to vector<1x32xf32>
    %c0_8 = arith.constant 0 : index
    %c0_9 = arith.constant 0 : index
    %c0_10 = arith.constant 0 : index
    %8 = vector.load %arg4[%c0_8, %c0_9, %c0_10] : memref<2x1x32xf32, #tpu.memory_space<vmem>>, vector<1x1x32xf32>
    %9 = vector.shape_cast %8 : vector<1x1x32xf32> to vector<1x32xf32>
    %c0_11 = arith.constant 0 : index
    %c0_12 = arith.constant 0 : index
    %c0_13 = arith.constant 0 : index
    %10 = vector.load %arg5[%c0_11, %c0_12, %c0_13] : memref<2x1x32xf32, #tpu.memory_space<vmem>>, vector<1x1x32xf32>
    %11 = vector.shape_cast %10 : vector<1x1x32xf32> to vector<1x32xf32>
    %cst = arith.constant dense<0.000000e+00> : vector<16x32xf32>
    %12 = tpu.matmul %3, %5, %cst {dimension_numbers = #tpu.dot_dimension_numbers<[1], [0], [0], [1], [0, 0, 1, 1], [], []>} : vector<16x32xf32>, vector<32x32xf32>, vector<16x32xf32> -> vector<16x32xf32>
    %13 = vector.broadcast %7 : vector<1x32xf32> to vector<16x32xf32>
    %14 = arith.addf %12, %13 : vector<16x32xf32>
    %cst_14 = arith.constant 0.000000e+00 : f32
    %15 = vector.broadcast %cst_14 : f32 to vector<16x32xf32>
    %16 = arith.maximumf %14, %15 : vector<16x32xf32>
    %cst_15 = arith.constant dense<0.000000e+00> : vector<16xf32>
    %17 = vector.multi_reduction <add>, %16, %cst_15 [1] : vector<16x32xf32> to vector<16xf32>
    %18 = vector.shape_cast %17 : vector<16xf32> to vector<16x1xf32>
    %cst_16 = arith.constant 3.200000e+01 : f32
    %19 = vector.broadcast %cst_16 : f32 to vector<16x1xf32>
    %20 = arith.divf %18, %19 : vector<16x1xf32>
    %21 = vector.broadcast %20 : vector<16x1xf32> to vector<16x32xf32>
    %22 = arith.subf %16, %21 : vector<16x32xf32>
    %23 = arith.mulf %22, %22 : vector<16x32xf32>
    %cst_17 = arith.constant dense<0.000000e+00> : vector<16xf32>
    %24 = vector.multi_reduction <add>, %23, %cst_17 [1] : vector<16x32xf32> to vector<16xf32>
    %25 = vector.shape_cast %24 : vector<16xf32> to vector<16x1xf32>
    %cst_18 = arith.constant 3.200000e+01 : f32
    %26 = vector.broadcast %cst_18 : f32 to vector<16x1xf32>
    %27 = arith.divf %25, %26 : vector<16x1xf32>
    %28 = vector.broadcast %20 : vector<16x1xf32> to vector<16x32xf32>
    %29 = arith.subf %16, %28 : vector<16x32xf32>
    %cst_19 = arith.constant 9.99999974E-6 : f32
    %30 = vector.broadcast %cst_19 : f32 to vector<16x1xf32>
    %31 = arith.addf %27, %30 : vector<16x1xf32>
    %32 = math.rsqrt %31 : vector<16x1xf32>
    %33 = vector.broadcast %32 : vector<16x1xf32> to vector<16x32xf32>
    %34 = arith.mulf %29, %33 : vector<16x32xf32>
    %35 = vector.broadcast %9 : vector<1x32xf32> to vector<16x32xf32>
    %36 = arith.mulf %34, %35 : vector<16x32xf32>
    %37 = vector.broadcast %11 : vector<1x32xf32> to vector<16x32xf32>
    %38 = arith.addf %36, %37 : vector<16x32xf32>
    %c1 = arith.constant 1 : index
    %c0_20 = arith.constant 0 : index
    %c0_21 = arith.constant 0 : index
    %39 = vector.load %arg2[%c1, %c0_20, %c0_21] : memref<2x32x32xf32, #tpu.memory_space<vmem>>, vector<1x32x32xf32>
    %40 = vector.shape_cast %39 : vector<1x32x32xf32> to vector<32x32xf32>
    %c1_22 = arith.constant 1 : index
    %c0_23 = arith.constant 0 : index
    %c0_24 = arith.constant 0 : index
    %41 = vector.load %arg3[%c1_22, %c0_23, %c0_24] : memref<2x1x32xf32, #tpu.memory_space<vmem>>, vector<1x1x32xf32>
    %42 = vector.shape_cast %41 : vector<1x1x32xf32> to vector<1x32xf32>
    %c1_25 = arith.constant 1 : index
    %c0_26 = arith.constant 0 : index
    %c0_27 = arith.constant 0 : index
    %43 = vector.load %arg4[%c1_25, %c0_26, %c0_27] : memref<2x1x32xf32, #tpu.memory_space<vmem>>, vector<1x1x32xf32>
    %44 = vector.shape_cast %43 : vector<1x1x32xf32> to vector<1x32xf32>
    %c1_28 = arith.constant 1 : index
    %c0_29 = arith.constant 0 : index
    %c0_30 = arith.constant 0 : index
    %45 = vector.load %arg5[%c1_28, %c0_29, %c0_30] : memref<2x1x32xf32, #tpu.memory_space<vmem>>, vector<1x1x32xf32>
    %46 = vector.shape_cast %45 : vector<1x1x32xf32> to vector<1x32xf32>
    %cst_31 = arith.constant dense<0.000000e+00> : vector<16x32xf32>
    %47 = tpu.matmul %38, %40, %cst_31 {dimension_numbers = #tpu.dot_dimension_numbers<[1], [0], [0], [1], [0, 0, 1, 1], [], []>} : vector<16x32xf32>, vector<32x32xf32>, vector<16x32xf32> -> vector<16x32xf32>
    %48 = vector.broadcast %42 : vector<1x32xf32> to vector<16x32xf32>
    %49 = arith.addf %47, %48 : vector<16x32xf32>
    %cst_32 = arith.constant 0.000000e+00 : f32
    %50 = vector.broadcast %cst_32 : f32 to vector<16x32xf32>
    %51 = arith.maximumf %49, %50 : vector<16x32xf32>
    %cst_33 = arith.constant dense<0.000000e+00> : vector<16xf32>
    %52 = vector.multi_reduction <add>, %51, %cst_33 [1] : vector<16x32xf32> to vector<16xf32>
    %53 = vector.shape_cast %52 : vector<16xf32> to vector<16x1xf32>
    %cst_34 = arith.constant 3.200000e+01 : f32
    %54 = vector.broadcast %cst_34 : f32 to vector<16x1xf32>
    %55 = arith.divf %53, %54 : vector<16x1xf32>
    %56 = vector.broadcast %55 : vector<16x1xf32> to vector<16x32xf32>
    %57 = arith.subf %51, %56 : vector<16x32xf32>
    %58 = arith.mulf %57, %57 : vector<16x32xf32>
    %cst_35 = arith.constant dense<0.000000e+00> : vector<16xf32>
    %59 = vector.multi_reduction <add>, %58, %cst_35 [1] : vector<16x32xf32> to vector<16xf32>
    %60 = vector.shape_cast %59 : vector<16xf32> to vector<16x1xf32>
    %cst_36 = arith.constant 3.200000e+01 : f32
    %61 = vector.broadcast %cst_36 : f32 to vector<16x1xf32>
    %62 = arith.divf %60, %61 : vector<16x1xf32>
    %63 = vector.broadcast %55 : vector<16x1xf32> to vector<16x32xf32>
    %64 = arith.subf %51, %63 : vector<16x32xf32>
    %cst_37 = arith.constant 9.99999974E-6 : f32
    %65 = vector.broadcast %cst_37 : f32 to vector<16x1xf32>
    %66 = arith.addf %62, %65 : vector<16x1xf32>
    %67 = math.rsqrt %66 : vector<16x1xf32>
    %68 = vector.broadcast %67 : vector<16x1xf32> to vector<16x32xf32>
    %69 = arith.mulf %64, %68 : vector<16x32xf32>
    %70 = vector.broadcast %44 : vector<1x32xf32> to vector<16x32xf32>
    %71 = arith.mulf %69, %70 : vector<16x32xf32>
    %72 = vector.broadcast %46 : vector<1x32xf32> to vector<16x32xf32>
    %73 = arith.addf %71, %72 : vector<16x32xf32>
    %c0_38 = arith.constant 0 : index
    %c0_39 = arith.constant 0 : index
    %74 = vector.load %arg13[%c0_38, %c0_39] : memref<16x32xf32, #tpu.memory_space<vmem>>, vector<16x32xf32>
    tpu.vector_store %arg13[%c0_38, %c0_39], %73 {strides = array<i32>} : memref<16x32xf32, #tpu.memory_space<vmem>>, vector<16x32xf32>,
    %c0_40 = arith.constant 0 : index
    %c0_41 = arith.constant 0 : index
    %75 = memref.load %arg11[%c0_40, %c0_41] : memref<1x1xf32, #tpu.memory_space<smem>>
    %76 = math.exp %75 : f32
    %cst_42 = arith.constant 1.000000e+00 : f32
    %77 = arith.addf %cst_42, %76 : f32
    %cst_43 = arith.constant 1.000000e-10 : f32
    %78 = arith.maximumf %77, %cst_43 : f32
    %cst_44 = arith.constant 1.000000e+00 : f32
    %79 = arith.divf %cst_44, %78 : f32
    %cst_45 = arith.constant 5.000000e-01 : f32
    %80 = arith.mulf %cst_45, %79 : f32
    %c0_46 = arith.constant 0 : index
    %c0_47 = arith.constant 0 : index
    %81 = vector.load %arg10[%c0_46, %c0_47] : memref<64x16xf32, #tpu.memory_space<vmem>>, vector<64x16xf32>
    %cst_48 = arith.constant 1.000000e+00 : f32
    %82 = vector.broadcast %cst_48 : f32 to vector<1x16xf32>
    %83 = arith.mulf %81, %81 : vector<64x16xf32>
    %cst_49 = arith.constant dense<0.000000e+00> : vector<1x64xf32>
    %84 = tpu.matmul %82, %83, %cst_49 {dimension_numbers = #tpu.dot_dimension_numbers<[1], [1], [0], [0], [0, 0, 1, 0], [], []>} : vector<1x16xf32>, vector<64x16xf32>, vector<1x64xf32> -> vector<1x64xf32>
    %85 = tpu.iota {dimensions = array<i32: 1>} : vector<16x64xi32>
    %cst_50 = arith.constant 0.000000e+00 : f32
    %86 = vector.broadcast %cst_50 : f32 to vector<1x1xf32>
    %cst_51 = arith.constant 0.000000e+00 : f32
    %87 = vector.broadcast %cst_51 : f32 to vector<1x1xf32>
    %cst_52 = arith.constant 0.000000e+00 : f32
    %88 = vector.broadcast %cst_52 : f32 to vector<1x64xf32>
    %89 = vector.extract_strided_slice %73 {offsets = [0, 0], sizes = [16, 16], strides = [1, 1]} : vector<16x32xf32> to vector<16x16xf32>
    %cst_53 = arith.constant dense<0.000000e+00> : vector<16x64xf32>
    %90 = tpu.matmul %89, %81, %cst_53 {dimension_numbers = #tpu.dot_dimension_numbers<[1], [1], [0], [0], [0, 0, 1, 0], [], []>} : vector<16x16xf32>, vector<64x16xf32>, vector<16x64xf32> -> vector<16x64xf32>
    %91 = arith.mulf %89, %89 : vector<16x16xf32>
    %cst_54 = arith.constant dense<0.000000e+00> : vector<16xf32>
    %92 = vector.multi_reduction <add>, %91, %cst_54 [1] : vector<16x16xf32> to vector<16xf32>
    %93 = vector.shape_cast %92 : vector<16xf32> to vector<16x1xf32>
    %cst_55 = arith.constant 0.000000e+00 : f32
    %94 = arith.subf %cst_55, %80 : f32
    %95 = vector.broadcast %93 : vector<16x1xf32> to vector<16x64xf32>
    %96 = vector.broadcast %84 : vector<1x64xf32> to vector<16x64xf32>
    %97 = arith.addf %95, %96 : vector<16x64xf32>
    %cst_56 = arith.constant 2.000000e+00 : f32
    %98 = vector.broadcast %cst_56 : f32 to vector<16x64xf32>
    %99 = arith.mulf %98, %90 : vector<16x64xf32>
    %100 = arith.subf %97, %99 : vector<16x64xf32>
    %101 = vector.broadcast %94 : f32 to vector<16x64xf32>
    %102 = arith.mulf %101, %100 : vector<16x64xf32>
    %cst_57 = arith.constant dense<0xFF800000> : vector<16xf32>
    %103 = vector.multi_reduction <maximumf>, %102, %cst_57 [1] : vector<16x64xf32> to vector<16xf32>
    %104 = vector.shape_cast %103 : vector<16xf32> to vector<16x1xf32>
    %105 = vector.broadcast %104 : vector<16x1xf32> to vector<16x64xf32>
    %106 = arith.subf %102, %105 : vector<16x64xf32>
    %107 = math.exp %106 : vector<16x64xf32>
    %cst_58 = arith.constant dense<0.000000e+00> : vector<16xf32>
    %108 = vector.multi_reduction <add>, %107, %cst_58 [1] : vector<16x64xf32> to vector<16xf32>
    %109 = vector.shape_cast %108 : vector<16xf32> to vector<16x1xf32>
    %110 = tpu.reciprocal %109 : vector<16x1xf32> -> vector<16x1xf32>
    %111 = math.log %109 : vector<16x1xf32>
    %112 = arith.mulf %107, %106 : vector<16x64xf32>
    %cst_59 = arith.constant dense<0.000000e+00> : vector<16xf32>
    %113 = vector.multi_reduction <add>, %112, %cst_59 [1] : vector<16x64xf32> to vector<16xf32>
    %114 = vector.shape_cast %113 : vector<16xf32> to vector<16x1xf32>
    %115 = arith.mulf %114, %110 : vector<16x1xf32>
    %116 = arith.subf %115, %111 : vector<16x1xf32>
    %117 = vector.shape_cast %116 : vector<16x1xf32> to vector<1x16x1xf32>
    %cst_60 = arith.constant dense<0.000000e+00> : vector<1xf32>
    %118 = vector.multi_reduction <add>, %117, %cst_60 [1, 2] : vector<1x16x1xf32> to vector<1xf32>
    %119 = vector.shape_cast %118 : vector<1xf32> to vector<1x1x1xf32>
    %120 = vector.extract %119[0, 0, 0] : f32 from vector<1x1x1xf32>
    %121 = vector.broadcast %120 : f32 to vector<1x1xf32>
    %122 = arith.addf %86, %121 : vector<1x1xf32>
    %123 = vector.broadcast %104 : vector<16x1xf32> to vector<16x64xf32>
    %124 = arith.cmpf oge, %102, %123 : vector<16x64xf32>
    %c64_i32 = arith.constant 64 : i32
    %125 = vector.broadcast %c64_i32 : i32 to vector<16x64xi32>
    %126 = arith.select %124, %85, %125 : vector<16x64xi1>, vector<16x64xi32>
    %cst_61 = arith.constant dense<2147483647> : vector<16xi32>
    %127 = vector.multi_reduction <minsi>, %126, %cst_61 [1] : vector<16x64xi32> to vector<16xi32>
    %128 = vector.shape_cast %127 : vector<16xi32> to vector<16x1xi32>
    %129 = vector.broadcast %128 : vector<16x1xi32> to vector<16x64xi32>
    %130 = arith.cmpi eq, %85, %129 : vector<16x64xi32>
    %131 = arith.extui %130 : vector<16x64xi1> to vector<16x64xi32>
    %132 = arith.sitofp %131 : vector<16x64xi32> to vector<16x64xf32>
    %cst_62 = arith.constant dense<0.000000e+00> : vector<16x16xf32>
    %133 = tpu.matmul %132, %81, %cst_62 {dimension_numbers = #tpu.dot_dimension_numbers<[1], [0], [0], [1], [0, 0, 1, 1], [], []>} : vector<16x64xf32>, vector<64x16xf32>, vector<16x16xf32> -> vector<16x16xf32>
    %134 = arith.subf %89, %133 : vector<16x16xf32>
    %135 = arith.mulf %134, %134 : vector<16x16xf32>
    %136 = vector.shape_cast %135 : vector<16x16xf32> to vector<1x16x16xf32>
    %cst_63 = arith.constant dense<0.000000e+00> : vector<1xf32>
    %137 = vector.multi_reduction <add>, %136, %cst_63 [1, 2] : vector<1x16x16xf32> to vector<1xf32>
    %138 = vector.shape_cast %137 : vector<1xf32> to vector<1x1x1xf32>
    %139 = vector.extract %138[0, 0, 0] : f32 from vector<1x1x1xf32>
    %140 = vector.broadcast %139 : f32 to vector<1x1xf32>
    %141 = arith.addf %87, %140 : vector<1x1xf32>
    %cst_64 = arith.constant dense<0.000000e+00> : vector<64xf32>
    %142 = vector.multi_reduction <add>, %132, %cst_64 [0] : vector<16x64xf32> to vector<64xf32>
    %143 = vector.shape_cast %142 : vector<64xf32> to vector<1x64xf32>
    %144 = arith.addf %88, %143 : vector<1x64xf32>
    %145 = vector.extract_strided_slice %73 {offsets = [0, 16], sizes = [16, 16], strides = [1, 1]} : vector<16x32xf32> to vector<16x16xf32>
    %cst_65 = arith.constant dense<0.000000e+00> : vector<16x64xf32>
    %146 = tpu.matmul %145, %81, %cst_65 {dimension_numbers = #tpu.dot_dimension_numbers<[1], [1], [0], [0], [0, 0, 1, 0], [], []>} : vector<16x16xf32>, vector<64x16xf32>, vector<16x64xf32> -> vector<16x64xf32>
    %147 = arith.mulf %145, %145 : vector<16x16xf32>
    %cst_66 = arith.constant dense<0.000000e+00> : vector<16xf32>
    %148 = vector.multi_reduction <add>, %147, %cst_66 [1] : vector<16x16xf32> to vector<16xf32>
    %149 = vector.shape_cast %148 : vector<16xf32> to vector<16x1xf32>
    %cst_67 = arith.constant 0.000000e+00 : f32
    %150 = arith.subf %cst_67, %80 : f32
    %151 = vector.broadcast %149 : vector<16x1xf32> to vector<16x64xf32>
    %152 = vector.broadcast %84 : vector<1x64xf32> to vector<16x64xf32>
    %153 = arith.addf %151, %152 : vector<16x64xf32>
    %cst_68 = arith.constant 2.000000e+00 : f32
    %154 = vector.broadcast %cst_68 : f32 to vector<16x64xf32>
    %155 = arith.mulf %154, %146 : vector<16x64xf32>
    %156 = arith.subf %153, %155 : vector<16x64xf32>
    %157 = vector.broadcast %150 : f32 to vector<16x64xf32>
    %158 = arith.mulf %157, %156 : vector<16x64xf32>
    %cst_69 = arith.constant dense<0xFF800000> : vector<16xf32>
    %159 = vector.multi_reduction <maximumf>, %158, %cst_69 [1] : vector<16x64xf32> to vector<16xf32>
    %160 = vector.shape_cast %159 : vector<16xf32> to vector<16x1xf32>
    %161 = vector.broadcast %160 : vector<16x1xf32> to vector<16x64xf32>
    %162 = arith.subf %158, %161 : vector<16x64xf32>
    %163 = math.exp %162 : vector<16x64xf32>
    %cst_70 = arith.constant dense<0.000000e+00> : vector<16xf32>
    %164 = vector.multi_reduction <add>, %163, %cst_70 [1] : vector<16x64xf32> to vector<16xf32>
    %165 = vector.shape_cast %164 : vector<16xf32> to vector<16x1xf32>
    %166 = tpu.reciprocal %165 : vector<16x1xf32> -> vector<16x1xf32>
    %167 = math.log %165 : vector<16x1xf32>
    %168 = arith.mulf %163, %162 : vector<16x64xf32>
    %cst_71 = arith.constant dense<0.000000e+00> : vector<16xf32>
    %169 = vector.multi_reduction <add>, %168, %cst_71 [1] : vector<16x64xf32> to vector<16xf32>
    %170 = vector.shape_cast %169 : vector<16xf32> to vector<16x1xf32>
    %171 = arith.mulf %170, %166 : vector<16x1xf32>
    %172 = arith.subf %171, %167 : vector<16x1xf32>
    %173 = vector.shape_cast %172 : vector<16x1xf32> to vector<1x16x1xf32>
    %cst_72 = arith.constant dense<0.000000e+00> : vector<1xf32>
    %174 = vector.multi_reduction <add>, %173, %cst_72 [1, 2] : vector<1x16x1xf32> to vector<1xf32>
    %175 = vector.shape_cast %174 : vector<1xf32> to vector<1x1x1xf32>
    %176 = vector.extract %175[0, 0, 0] : f32 from vector<1x1x1xf32>
    %177 = vector.broadcast %176 : f32 to vector<1x1xf32>
    %178 = arith.addf %122, %177 : vector<1x1xf32>
    %179 = vector.broadcast %160 : vector<16x1xf32> to vector<16x64xf32>
    %180 = arith.cmpf oge, %158, %179 : vector<16x64xf32>
    %c64_i32_73 = arith.constant 64 : i32
    %181 = vector.broadcast %c64_i32_73 : i32 to vector<16x64xi32>
    %182 = arith.select %180, %85, %181 : vector<16x64xi1>, vector<16x64xi32>
    %cst_74 = arith.constant dense<2147483647> : vector<16xi32>
    %183 = vector.multi_reduction <minsi>, %182, %cst_74 [1] : vector<16x64xi32> to vector<16xi32>
    %184 = vector.shape_cast %183 : vector<16xi32> to vector<16x1xi32>
    %185 = vector.broadcast %184 : vector<16x1xi32> to vector<16x64xi32>
    %186 = arith.cmpi eq, %85, %185 : vector<16x64xi32>
    %187 = arith.extui %186 : vector<16x64xi1> to vector<16x64xi32>
    %188 = arith.sitofp %187 : vector<16x64xi32> to vector<16x64xf32>
    %cst_75 = arith.constant dense<0.000000e+00> : vector<16x16xf32>
    %189 = tpu.matmul %188, %81, %cst_75 {dimension_numbers = #tpu.dot_dimension_numbers<[1], [0], [0], [1], [0, 0, 1, 1], [], []>} : vector<16x64xf32>, vector<64x16xf32>, vector<16x16xf32> -> vector<16x16xf32>
    %190 = arith.subf %145, %189 : vector<16x16xf32>
    %191 = arith.mulf %190, %190 : vector<16x16xf32>
    %192 = vector.shape_cast %191 : vector<16x16xf32> to vector<1x16x16xf32>
    %cst_76 = arith.constant dense<0.000000e+00> : vector<1xf32>
    %193 = vector.multi_reduction <add>, %192, %cst_76 [1, 2] : vector<1x16x16xf32> to vector<1xf32>
    %194 = vector.shape_cast %193 : vector<1xf32> to vector<1x1x1xf32>
    %195 = vector.extract %194[0, 0, 0] : f32 from vector<1x1x1xf32>
    %196 = vector.broadcast %195 : f32 to vector<1x1xf32>
    %197 = arith.addf %141, %196 : vector<1x1xf32>
    %cst_77 = arith.constant dense<0.000000e+00> : vector<64xf32>
    %198 = vector.multi_reduction <add>, %188, %cst_77 [0] : vector<16x64xf32> to vector<64xf32>
    %199 = vector.shape_cast %198 : vector<64xf32> to vector<1x64xf32>
    %200 = arith.addf %144, %199 : vector<1x64xf32>
    %201 = tpu.concatenate %133, %189 in 1 : vector<16x16xf32>, vector<16x16xf32> -> vector<16x32xf32>
    %c0_78 = arith.constant 0 : index
    %c0_79 = arith.constant 0 : index
    %202 = vector.load %arg14[%c0_78, %c0_79] : memref<16x32xf32, #tpu.memory_space<vmem>>, vector<16x32xf32>
    tpu.vector_store %arg14[%c0_78, %c0_79], %201 {strides = array<i32>} : memref<16x32xf32, #tpu.memory_space<vmem>>, vector<16x32xf32>,
    %c0_80 = arith.constant 0 : index
    %c0_81 = arith.constant 0 : index
    %203 = vector.load %arg17[%c0_80, %c0_81] : memref<1x1xf32, #tpu.memory_space<vmem>>, vector<1x1xf32>
    %204 = arith.addf %203, %178 : vector<1x1xf32>
    %c0_82 = arith.constant 0 : index
    %c0_83 = arith.constant 0 : index
    %205 = vector.load %arg17[%c0_82, %c0_83] : memref<1x1xf32, #tpu.memory_space<vmem>>, vector<1x1xf32>
    tpu.vector_store %arg17[%c0_82, %c0_83], %204 {strides = array<i32>} : memref<1x1xf32, #tpu.memory_space<vmem>>, vector<1x1xf32>,
    %c0_84 = arith.constant 0 : index
    %c0_85 = arith.constant 0 : index
    %206 = vector.load %arg18[%c0_84, %c0_85] : memref<1x1xf32, #tpu.memory_space<vmem>>, vector<1x1xf32>
    %207 = arith.addf %206, %197 : vector<1x1xf32>
    %c0_86 = arith.constant 0 : index
    %c0_87 = arith.constant 0 : index
    %208 = vector.load %arg18[%c0_86, %c0_87] : memref<1x1xf32, #tpu.memory_space<vmem>>, vector<1x1xf32>
    tpu.vector_store %arg18[%c0_86, %c0_87], %207 {strides = array<i32>} : memref<1x1xf32, #tpu.memory_space<vmem>>, vector<1x1xf32>,
    %c0_88 = arith.constant 0 : index
    %c0_89 = arith.constant 0 : index
    %209 = vector.load %arg19[%c0_88, %c0_89] : memref<1x64xf32, #tpu.memory_space<vmem>>, vector<1x64xf32>
    %210 = arith.addf %209, %200 : vector<1x64xf32>
    %c0_90 = arith.constant 0 : index
    %c0_91 = arith.constant 0 : index
    %211 = vector.load %arg19[%c0_90, %c0_91] : memref<1x64xf32, #tpu.memory_space<vmem>>, vector<1x64xf32>
    tpu.vector_store %arg19[%c0_90, %c0_91], %210 {strides = array<i32>} : memref<1x64xf32, #tpu.memory_space<vmem>>, vector<1x64xf32>,
    %c0_92 = arith.constant 0 : index
    %c0_93 = arith.constant 0 : index
    %c0_94 = arith.constant 0 : index
    %212 = vector.load %arg6[%c0_92, %c0_93, %c0_94] : memref<2x32x32xf32, #tpu.memory_space<vmem>>, vector<1x32x32xf32>
    %213 = vector.shape_cast %212 : vector<1x32x32xf32> to vector<32x32xf32>
    %c0_95 = arith.constant 0 : index
    %c0_96 = arith.constant 0 : index
    %c0_97 = arith.constant 0 : index
    %214 = vector.load %arg7[%c0_95, %c0_96, %c0_97] : memref<2x1x32xf32, #tpu.memory_space<vmem>>, vector<1x1x32xf32>
    %215 = vector.shape_cast %214 : vector<1x1x32xf32> to vector<1x32xf32>
    %c0_98 = arith.constant 0 : index
    %c0_99 = arith.constant 0 : index
    %c0_100 = arith.constant 0 : index
    %216 = vector.load %arg8[%c0_98, %c0_99, %c0_100] : memref<2x1x32xf32, #tpu.memory_space<vmem>>, vector<1x1x32xf32>
    %217 = vector.shape_cast %216 : vector<1x1x32xf32> to vector<1x32xf32>
    %c0_101 = arith.constant 0 : index
    %c0_102 = arith.constant 0 : index
    %c0_103 = arith.constant 0 : index
    %218 = vector.load %arg9[%c0_101, %c0_102, %c0_103] : memref<2x1x32xf32, #tpu.memory_space<vmem>>, vector<1x1x32xf32>
    %219 = vector.shape_cast %218 : vector<1x1x32xf32> to vector<1x32xf32>
    %cst_104 = arith.constant dense<0.000000e+00> : vector<16x32xf32>
    %220 = tpu.matmul %201, %213, %cst_104 {dimension_numbers = #tpu.dot_dimension_numbers<[1], [0], [0], [1], [0, 0, 1, 1], [], []>} : vector<16x32xf32>, vector<32x32xf32>, vector<16x32xf32> -> vector<16x32xf32>
    %221 = vector.broadcast %215 : vector<1x32xf32> to vector<16x32xf32>
    %222 = arith.addf %220, %221 : vector<16x32xf32>
    %cst_105 = arith.constant 0.000000e+00 : f32
    %223 = vector.broadcast %cst_105 : f32 to vector<16x32xf32>
    %224 = arith.maximumf %222, %223 : vector<16x32xf32>
    %cst_106 = arith.constant dense<0.000000e+00> : vector<16xf32>
    %225 = vector.multi_reduction <add>, %224, %cst_106 [1] : vector<16x32xf32> to vector<16xf32>
    %226 = vector.shape_cast %225 : vector<16xf32> to vector<16x1xf32>
    %cst_107 = arith.constant 3.200000e+01 : f32
    %227 = vector.broadcast %cst_107 : f32 to vector<16x1xf32>
    %228 = arith.divf %226, %227 : vector<16x1xf32>
    %229 = vector.broadcast %228 : vector<16x1xf32> to vector<16x32xf32>
    %230 = arith.subf %224, %229 : vector<16x32xf32>
    %231 = arith.mulf %230, %230 : vector<16x32xf32>
    %cst_108 = arith.constant dense<0.000000e+00> : vector<16xf32>
    %232 = vector.multi_reduction <add>, %231, %cst_108 [1] : vector<16x32xf32> to vector<16xf32>
    %233 = vector.shape_cast %232 : vector<16xf32> to vector<16x1xf32>
    %cst_109 = arith.constant 3.200000e+01 : f32
    %234 = vector.broadcast %cst_109 : f32 to vector<16x1xf32>
    %235 = arith.divf %233, %234 : vector<16x1xf32>
    %236 = vector.broadcast %228 : vector<16x1xf32> to vector<16x32xf32>
    %237 = arith.subf %224, %236 : vector<16x32xf32>
    %cst_110 = arith.constant 9.99999974E-6 : f32
    %238 = vector.broadcast %cst_110 : f32 to vector<16x1xf32>
    %239 = arith.addf %235, %238 : vector<16x1xf32>
    %240 = math.rsqrt %239 : vector<16x1xf32>
    %241 = vector.broadcast %240 : vector<16x1xf32> to vector<16x32xf32>
    %242 = arith.mulf %237, %241 : vector<16x32xf32>
    %243 = vector.broadcast %217 : vector<1x32xf32> to vector<16x32xf32>
    %244 = arith.mulf %242, %243 : vector<16x32xf32>
    %245 = vector.broadcast %219 : vector<1x32xf32> to vector<16x32xf32>
    %246 = arith.addf %244, %245 : vector<16x32xf32>
    %c1_111 = arith.constant 1 : index
    %c0_112 = arith.constant 0 : index
    %c0_113 = arith.constant 0 : index
    %247 = vector.load %arg6[%c1_111, %c0_112, %c0_113] : memref<2x32x32xf32, #tpu.memory_space<vmem>>, vector<1x32x32xf32>
    %248 = vector.shape_cast %247 : vector<1x32x32xf32> to vector<32x32xf32>
    %c1_114 = arith.constant 1 : index
    %c0_115 = arith.constant 0 : index
    %c0_116 = arith.constant 0 : index
    %249 = vector.load %arg7[%c1_114, %c0_115, %c0_116] : memref<2x1x32xf32, #tpu.memory_space<vmem>>, vector<1x1x32xf32>
    %250 = vector.shape_cast %249 : vector<1x1x32xf32> to vector<1x32xf32>
    %c1_117 = arith.constant 1 : index
    %c0_118 = arith.constant 0 : index
    %c0_119 = arith.constant 0 : index
    %251 = vector.load %arg8[%c1_117, %c0_118, %c0_119] : memref<2x1x32xf32, #tpu.memory_space<vmem>>, vector<1x1x32xf32>
    %252 = vector.shape_cast %251 : vector<1x1x32xf32> to vector<1x32xf32>
    %c1_120 = arith.constant 1 : index
    %c0_121 = arith.constant 0 : index
    %c0_122 = arith.constant 0 : index
    %253 = vector.load %arg9[%c1_120, %c0_121, %c0_122] : memref<2x1x32xf32, #tpu.memory_space<vmem>>, vector<1x1x32xf32>
    %254 = vector.shape_cast %253 : vector<1x1x32xf32> to vector<1x32xf32>
    %cst_123 = arith.constant dense<0.000000e+00> : vector<16x32xf32>
    %255 = tpu.matmul %246, %248, %cst_123 {dimension_numbers = #tpu.dot_dimension_numbers<[1], [0], [0], [1], [0, 0, 1, 1], [], []>} : vector<16x32xf32>, vector<32x32xf32>, vector<16x32xf32> -> vector<16x32xf32>
    %256 = vector.broadcast %250 : vector<1x32xf32> to vector<16x32xf32>
    %257 = arith.addf %255, %256 : vector<16x32xf32>
    %cst_124 = arith.constant 0.000000e+00 : f32
    %258 = vector.broadcast %cst_124 : f32 to vector<16x32xf32>
    %259 = arith.maximumf %257, %258 : vector<16x32xf32>
    %cst_125 = arith.constant dense<0.000000e+00> : vector<16xf32>
    %260 = vector.multi_reduction <add>, %259, %cst_125 [1] : vector<16x32xf32> to vector<16xf32>
    %261 = vector.shape_cast %260 : vector<16xf32> to vector<16x1xf32>
    %cst_126 = arith.constant 3.200000e+01 : f32
    %262 = vector.broadcast %cst_126 : f32 to vector<16x1xf32>
    %263 = arith.divf %261, %262 : vector<16x1xf32>
    %264 = vector.broadcast %263 : vector<16x1xf32> to vector<16x32xf32>
    %265 = arith.subf %259, %264 : vector<16x32xf32>
    %266 = arith.mulf %265, %265 : vector<16x32xf32>
    %cst_127 = arith.constant dense<0.000000e+00> : vector<16xf32>
    %267 = vector.multi_reduction <add>, %266, %cst_127 [1] : vector<16x32xf32> to vector<16xf32>
    %268 = vector.shape_cast %267 : vector<16xf32> to vector<16x1xf32>
    %cst_128 = arith.constant 3.200000e+01 : f32
    %269 = vector.broadcast %cst_128 : f32 to vector<16x1xf32>
    %270 = arith.divf %268, %269 : vector<16x1xf32>
    %271 = vector.broadcast %263 : vector<16x1xf32> to vector<16x32xf32>
    %272 = arith.subf %259, %271 : vector<16x32xf32>
    %cst_129 = arith.constant 9.99999974E-6 : f32
    %273 = vector.broadcast %cst_129 : f32 to vector<16x1xf32>
    %274 = arith.addf %270, %273 : vector<16x1xf32>
    %275 = math.rsqrt %274 : vector<16x1xf32>
    %276 = vector.broadcast %275 : vector<16x1xf32> to vector<16x32xf32>
    %277 = arith.mulf %272, %276 : vector<16x32xf32>
    %278 = vector.broadcast %252 : vector<1x32xf32> to vector<16x32xf32>
    %279 = arith.mulf %277, %278 : vector<16x32xf32>
    %280 = vector.broadcast %254 : vector<1x32xf32> to vector<16x32xf32>
    %281 = arith.addf %279, %280 : vector<16x32xf32>
    %c0_130 = arith.constant 0 : index
    %c0_131 = arith.constant 0 : index
    %282 = vector.load %arg12[%c0_130, %c0_131] : memref<16x32xf32, #tpu.memory_space<vmem>>, vector<16x32xf32>
    tpu.vector_store %arg12[%c0_130, %c0_131], %281 {strides = array<i32>} : memref<16x32xf32, #tpu.memory_space<vmem>>, vector<16x32xf32>,
    %c0_i32_132 = arith.constant 0 : i32
    %283 = arith.cmpi eq, %arg0, %c0_i32_132 : i32
    %284 = arith.extui %283 : i1 to i32
    %c0_i32_133 = arith.constant 0 : i32
    %285 = arith.cmpi ne, %284, %c0_i32_133 : i32
    scf.if %285 {
      %c0_134 = arith.constant 0 : index
      %c0_135 = arith.constant 0 : index
      %286 = vector.load %arg17[%c0_134, %c0_135] : memref<1x1xf32, #tpu.memory_space<vmem>>, vector<1x1xf32>
      %c0_136 = arith.constant 0 : index
      %c0_137 = arith.constant 0 : index
      %287 = vector.load %arg18[%c0_136, %c0_137] : memref<1x1xf32, #tpu.memory_space<vmem>>, vector<1x1xf32>
      %288 = vector.broadcast %80 : f32 to vector<1x1xf32>
      %289 = arith.mulf %287, %288 : vector<1x1xf32>
      %290 = arith.addf %286, %289 : vector<1x1xf32>
      %cst_138 = arith.constant 2.000000e+00 : f32
      %291 = vector.broadcast %cst_138 : f32 to vector<1x1xf32>
      %292 = arith.divf %290, %291 : vector<1x1xf32>
      %c0_139 = arith.constant 0 : index
      %c0_140 = arith.constant 0 : index
      %293 = vector.load %arg15[%c0_139, %c0_140] : memref<1x1xf32, #tpu.memory_space<vmem>>, vector<1x1xf32>
      tpu.vector_store %arg15[%c0_139, %c0_140], %292 {strides = array<i32>} : memref<1x1xf32, #tpu.memory_space<vmem>>, vector<1x1xf32>,
      %c0_141 = arith.constant 0 : index
      %c0_142 = arith.constant 0 : index
      %294 = vector.load %arg19[%c0_141, %c0_142] : memref<1x64xf32, #tpu.memory_space<vmem>>, vector<1x64xf32>
      %cst_143 = arith.constant 3.200000e+01 : f32
      %295 = vector.broadcast %cst_143 : f32 to vector<1x64xf32>
      %296 = arith.divf %294, %295 : vector<1x64xf32>
      %cst_144 = arith.constant 1.000000e-07 : f32
      %297 = vector.broadcast %cst_144 : f32 to vector<1x64xf32>
      %298 = arith.addf %296, %297 : vector<1x64xf32>
      %299 = math.log %298 : vector<1x64xf32>
      %300 = arith.mulf %296, %299 : vector<1x64xf32>
      %301 = vector.shape_cast %300 : vector<1x64xf32> to vector<1x1x64xf32>
      %cst_145 = arith.constant dense<0.000000e+00> : vector<1xf32>
      %302 = vector.multi_reduction <add>, %301, %cst_145 [1, 2] : vector<1x1x64xf32> to vector<1xf32>
      %303 = vector.shape_cast %302 : vector<1xf32> to vector<1x1x1xf32>
      %304 = vector.extract %303[0, 0, 0] : f32 from vector<1x1x1xf32>
      %305 = vector.broadcast %304 : f32 to vector<1x1xf32>
      %cst_146 = arith.constant 0.000000e+00 : f32
      %306 = vector.broadcast %cst_146 : f32 to vector<1x1xf32>
      %307 = arith.subf %306, %305 : vector<1x1xf32>
      %308 = math.exp %307 : vector<1x1xf32>
      %c0_147 = arith.constant 0 : index
      %c0_148 = arith.constant 0 : index
      %309 = vector.load %arg16[%c0_147, %c0_148] : memref<1x1xf32, #tpu.memory_space<vmem>>, vector<1x1xf32>
      tpu.vector_store %arg16[%c0_147, %c0_148], %308 {strides = array<i32>} : memref<1x1xf32, #tpu.memory_space<vmem>>, vector<1x1xf32>,
    } else {
    }
    return
  }
  func.func @transform_0(%arg0: i32) -> (i32, i32) {
    %c0_i32 = arith.constant 0 : i32
    %c0_i32_0 = arith.constant 0 : i32
    return %arg0, %c0_i32 : i32, i32
  }
  func.func @transform_1(%arg0: i32) -> (i32, i32, i32) {
    %c0_i32 = arith.constant 0 : i32
    %c0_i32_0 = arith.constant 0 : i32
    %c0_i32_1 = arith.constant 0 : i32
    %c0_i32_2 = arith.constant 0 : i32
    return %c0_i32, %c0_i32_0, %c0_i32_1 : i32, i32, i32
  }
  func.func @transform_2(%arg0: i32) -> (i32, i32, i32) {
    %c0_i32 = arith.constant 0 : i32
    %c0_i32_0 = arith.constant 0 : i32
    %c0_i32_1 = arith.constant 0 : i32
    %c0_i32_2 = arith.constant 0 : i32
    return %c0_i32, %c0_i32_0, %c0_i32_1 : i32, i32, i32
  }
  func.func @transform_3(%arg0: i32) -> (i32, i32, i32) {
    %c0_i32 = arith.constant 0 : i32
    %c0_i32_0 = arith.constant 0 : i32
    %c0_i32_1 = arith.constant 0 : i32
    %c0_i32_2 = arith.constant 0 : i32
    return %c0_i32, %c0_i32_0, %c0_i32_1 : i32, i32, i32
  }
  func.func @transform_4(%arg0: i32) -> (i32, i32, i32) {
    %c0_i32 = arith.constant 0 : i32
    %c0_i32_0 = arith.constant 0 : i32
    %c0_i32_1 = arith.constant 0 : i32
    %c0_i32_2 = arith.constant 0 : i32
    return %c0_i32, %c0_i32_0, %c0_i32_1 : i32, i32, i32
  }
  func.func @transform_5(%arg0: i32) -> (i32, i32, i32) {
    %c0_i32 = arith.constant 0 : i32
    %c0_i32_0 = arith.constant 0 : i32
    %c0_i32_1 = arith.constant 0 : i32
    %c0_i32_2 = arith.constant 0 : i32
    return %c0_i32, %c0_i32_0, %c0_i32_1 : i32, i32, i32
  }
  func.func @transform_6(%arg0: i32) -> (i32, i32, i32) {
    %c0_i32 = arith.constant 0 : i32
    %c0_i32_0 = arith.constant 0 : i32
    %c0_i32_1 = arith.constant 0 : i32
    %c0_i32_2 = arith.constant 0 : i32
    return %c0_i32, %c0_i32_0, %c0_i32_1 : i32, i32, i32
  }
  func.func @transform_7(%arg0: i32) -> (i32, i32, i32) {
    %c0_i32 = arith.constant 0 : i32
    %c0_i32_0 = arith.constant 0 : i32
    %c0_i32_1 = arith.constant 0 : i32
    %c0_i32_2 = arith.constant 0 : i32
    return %c0_i32, %c0_i32_0, %c0_i32_1 : i32, i32, i32
  }
  func.func @transform_8(%arg0: i32) -> (i32, i32, i32) {
    %c0_i32 = arith.constant 0 : i32
    %c0_i32_0 = arith.constant 0 : i32
    %c0_i32_1 = arith.constant 0 : i32
    %c0_i32_2 = arith.constant 0 : i32
    return %c0_i32, %c0_i32_0, %c0_i32_1 : i32, i32, i32
  }
  func.func @transform_9(%arg0: i32) -> (i32, i32) {
    %c0_i32 = arith.constant 0 : i32
    %c0_i32_0 = arith.constant 0 : i32
    %c0_i32_1 = arith.constant 0 : i32
    return %c0_i32, %c0_i32_0 : i32, i32
  }
  func.func @transform_10(%arg0: i32) -> (i32, i32) {
    %c0_i32 = arith.constant 0 : i32
    %c0_i32_0 = arith.constant 0 : i32
    %c0_i32_1 = arith.constant 0 : i32
    return %c0_i32, %c0_i32_0 : i32, i32
  }
  func.func @transform_11(%arg0: i32) -> (i32, i32) {
    %c0_i32 = arith.constant 0 : i32
    %c0_i32_0 = arith.constant 0 : i32
    return %arg0, %c0_i32 : i32, i32
  }
  func.func @transform_12(%arg0: i32) -> (i32, i32) {
    %c0_i32 = arith.constant 0 : i32
    %c0_i32_0 = arith.constant 0 : i32
    return %arg0, %c0_i32 : i32, i32
  }
  func.func @transform_13(%arg0: i32) -> (i32, i32) {
    %c0_i32 = arith.constant 0 : i32
    %c0_i32_0 = arith.constant 0 : i32
    return %arg0, %c0_i32 : i32, i32
  }
  func.func @transform_14(%arg0: i32) -> (i32, i32) {
    %c0_i32 = arith.constant 0 : i32
    %c0_i32_0 = arith.constant 0 : i32
    %c0_i32_1 = arith.constant 0 : i32
    return %c0_i32, %c0_i32_0 : i32, i32
  }
  func.func @transform_15(%arg0: i32) -> (i32, i32) {
    %c0_i32 = arith.constant 0 : i32
    %c0_i32_0 = arith.constant 0 : i32
    %c0_i32_1 = arith.constant 0 : i32
    return %c0_i32, %c0_i32_0 : i32, i32
  }
}

</mosaic_0001>

<bundles_post_ra>
// kernel: tpu_custom_call.1
= control target key start
LH: loop header
LB: loop body
LE: loop exit
PB: predicated region body
PF: predicated region fallthrough
CT: control target
= control target key end

     0   :  { %22 = vsyncpa [#allocation7], 0  ;;  %s2727_s0 = inlined_call_operand.vmem [shape: f32[16,32], index: 0, kind: input, shape index: {}]   ;;  %s2728_s1 = inlined_call_operand.vmem [shape: f32[2,32,32], index: 1, kind: input, shape index: {}]   ;;  %s2729_s2 = inlined_call_operand.vmem [shape: f32[2,1,32], index: 2, kind: input, shape index: {}]   ;;  %s2730_s3 = inlined_call_operand.vmem [shape: f32[2,1,32], index: 3, kind: input, shape index: {}]   ;;  %s2731_s4 = inlined_call_operand.vmem [shape: f32[2,1,32], index: 4, kind: input, shape index: {}]   ;;  %s2732_s5 = inlined_call_operand.hbm [shape: f32[2,32,32], index: 5, kind: input, shape index: {}]   ;;  %s2733_s6 = inlined_call_operand.vmem [shape: f32[2,1,32], index: 6, kind: input, shape index: {}]   ;;  %s2734_s7 = inlined_call_operand.vmem [shape: f32[2,1,32], index: 7, kind: input, shape index: {}]   ;;  %s2735_s8 = inlined_call_operand.vmem [shape: f32[2,1,32], index: 8, kind: input, shape index: {}]   ;;  %s2736_s9 = inlined_call_operand.vmem [shape: f32[64,16], index: 9, kind: input, shape index: {}]   ;;  %s2737_s10 = inlined_call_operand.<no memory space> [shape: f32[1,1], index: 10, kind: input, shape index: {}]   ;;  %s2738_s11 = inlined_call_operand.hbm [shape: f32[16,32], index: 11, kind: output, shape index: {0}]   ;;  %s2739_s12 = inlined_call_operand.hbm [shape: f32[16,32], index: 12, kind: output, shape index: {1}]   ;;  %s2740_s13 = inlined_call_operand.hbm [shape: f32[16,32], index: 13, kind: output, shape index: {2}]   ;;  %s2741_s14 = inlined_call_operand.hbm [shape: f32[1,1], index: 14, kind: output, shape index: {3}]   ;;  %s2742_s15 = inlined_call_operand.hbm [shape: f32[1,1], index: 15, kind: output, shape index: {4}]  }
   0x1   :  { %23 = vsyncpa [#allocation8], 0 }
   0x2   :  { %24 = vsyncpa [#allocation11], 0 }
   0x3   :  { %25 = vsyncpa [#allocation14], 0  ;;  %s2159_s18 = smov [#allocation6]   ;;  %s2019_s22 = scalar_lea.hbm %s2732_s5, 1024 }
   0x4   :  { %s41_s19 = sshll.u32 %s2159_s18, 4  ;;  %p2020_p0 = scmp.ne.s32.totalorder %s2732_s5, %s2019_s22  ;;  %s42_s19 = int_to_ptr.vmem [resolvable:$true] %s41_s19 }
   0x5   :  { %p2023_p1 = scmp.lt.u32.totalorder %s2019_s22, %s2732_s5 }
   0x7   :  { %p2025_p2 = pnand %p2023_p1, %p2020_p0 }
   0x9   :  { %2028 = shalt.err (!%p2025_p2)
}
   0xa   :  { %s2029_s27 = scalar_lea.vmem %s42_s19, 1024  ;;  %p2034_p4 = scmp.lt.s32.totalorder %s42_s19, %s42_s19 }
   0xb   :  { %p2030_p3 = scmp.ne.s32.totalorder %s42_s19, %s2029_s27  ;;  %p2035_p5 = scmp.lt.s32.totalorder %s2029_s27, %s2029_s27 }
   0xd   :  { %p2036_p6 = por %p2035_p5, %p2034_p4 }
   0xf   :  { %p2037_p7 = pnand %p2036_p6, %p2030_p3 }
  0x11   :  { %2040 = shalt.err (!%p2037_p7)
}
  0x12   :  { %s2160_s28 = smov 128   ;;  %s2161_s29 = smov 8  }
  0x13   :  { %47 = dma.hbm_to_vmem [thread:$0]  %s2732_s5, 1024, %s42_s19, [#allocation7], %s2160_s28, %s2160_s28, %s2161_s29  }
  0x14   :  { %2151 = dma.done.wait [#allocation7], 1024  }
  0x15   :  { %2152 = vsyncadd [#allocation7], 4294966272  ;;  %vm85_vm0 = vcmask 261120   ;;  %v72_v0 = vld [vmem:[%s2728_s1] sm:$0xff]  ;;  %v73_v1 = vld [vmem:[%s2728_s1 + $0x8] sm:$0xff]  ;;  %vm383_vm1 = vcmask 130048  }
  0x16   :  { %v74_v2 = vld [vmem:[%s2728_s1 + $0x10] sm:$0xff]  ;;  %v1814_v3 = vpack.c.bf16 %v73_v1, %v72_v0  ;;  %v75_v4 = vld [vmem:[%s2728_s1 + $0x18] sm:$0xff]  ;;  %v70_v5 = vld [vmem:[%s2727_s0] sm:$0xff]  ;;  %v2162_v60 = vmov 0.0|0.0   ;;  %vm2163_vm3 = vmmov 0   ;;  %vm610_vm4 = vcmask 523264  }
  0x17   :  { %v1818_v6 = vpack.c.bf16 %v75_v4, %v74_v2  ;;  %1683 = vmatprep.mubr.msk.f32.mxu0 %vm85_vm0, %v70_v5  ;;  %v71_v7 = vld [vmem:[%s2727_s0 + $0x8] sm:$0xff]  ;;  %v1535_v8 = vld [vmem:[%s2729_s2] ss:$0 sm:$0xff]  ;;  %v1542_v29 = vld [vmem:[%s2728_s1 + $0x30] sm:$0xff]  ;;  %v2164_v5 = vmov 0.0   ;;  %v481_v2 = vlaneseq  ;;  %vm68_vm15 = vcmask 516096  }
  0x18   :  { %1815 = vmatprep.subr.bf16.mxu0 %v1814_v3  ;;  %v1540_v27 = vld [vmem:[%s2728_s1 + $0x20] sm:$0xff]  ;;  %v1541_v28 = vld [vmem:[%s2728_s1 + $0x28] sm:$0xff]  ;;  %v1543_v31 = vld [vmem:[%s2728_s1 + $0x38] sm:$0xff]  ;;  %s2166_s18 = smov 1e-10   ;;  %s2168_s23 = smov 16  }
  0x19   :  { %1817 = vmatpush3.bf16.msra.mxu0 %v1814_v3  ;;  %v1822_v30 = vpack.c.bf16 %v1541_v28, %v1540_v27  ;;  %v1826_v32 = vpack.c.bf16 %v1543_v31, %v1542_v29  ;;  %v1538_v40 = vld [vmem:[%s2730_s3] ss:$0 sm:$0xff]  ;;  %v1547_v49 = vld [vmem:[%s2729_s2 + $0x1] ss:$0 sm:$0xff]  ;;  %v368_v59 = vld [vmem:[%s2736_s9 + $0x8] sm:$0xff] }
  0x1a   :  { %1819 = vmatprep.subr.bf16.mxu0 %v1818_v6  ;;  %v1539_v42 = vld [vmem:[%s2731_s4] ss:$0 sm:$0xff]  ;;  %v376_v62 = vmul.f32 %v368_v59, %v368_v59  ;;  %v369_v0 = vld [vmem:[%s2736_s9 + $0x10] sm:$0xff]  ;;  %v370_v1 = vld [vmem:[%s2736_s9 + $0x18] sm:$0xff]  ;;  %69 = vst.msk [vmem:[#allocation4] sm:$0x1] %vm68_vm15, %v2164_v5 }
  0x1b   :  { %1823 = vmatprep.subr.bf16.mxu1 %v1822_v30  ;;  %v367_v58 = vld [vmem:[%s2736_s9] sm:$0xff]  ;;  %vm2347_vm2 = vmpackc.low %vm383_vm1, %vm383_vm1  ;;  %v2351_v3 = vpack.c.bf16 %v370_v1, %v369_v0 }
  0x1c   :  { %1825 = vmatpush3.bf16.msra.mxu1 %v1822_v30  ;;  %v375_v61 = vmul.f32 %v367_v58, %v367_v58  ;;  %v2337_v63 = vpack.c.bf16 %v368_v59, %v367_v58 }
  0x1d   :  { %1821 = vmatpush3.bf16.msra.mxu0 %v1818_v6  ;;  %1827 = vmatprep.subr.bf16.mxu1 %v1826_v32  ;;  %v377_v6 = vmul.f32 %v369_v0, %v369_v0 }
  0x1e   :  { %1830 = vmatprep.subr.bf16.mxu0 %v2162_v60  ;;  %v1831_v4 = vpack.c.bf16 %v376_v62, %v375_v61 }
  0x20   :  { %1684 = vmatmul.mubr.msk.f32.vlgmr.msra.gmra.mrb[0].mxu0 %vm85_vm0, %v71_v7  ;;  %1829 = vmatpush3.bf16.msra.mxu1 %v1826_v32  ;;  %v378_v7 = vmul.f32 %v370_v1, %v370_v1  ;;  %v357_v32 = vstv %s2737_s10 }
  0x21   :  { %1713 = vmatprep.mubr.msk.f32.mxu0 %vm2163_vm3, %v2164_v5  ;;  %1848 = vmatprep.subr.msk.bf16.mxu1 %vm2347_vm2, %v2337_v63 }
  0x26   :  { %1833 = vmatpush3.bf16.xpose.msk.msra.mxu0 %vm2347_vm2, %v1831_v4  ;;  %v598_v4 = vshrl.u32 %v481_v2, 7 }
  0x27   :  { %1834 = vmatprep.subr.bf16.mxu0 %v2162_v60 }
  0xf3   :  { %v1685_v9 = vpop.f32.mrb[0].mxu0 }
  0xf4   :  { %v158_v10 = vpop.f32.mrb[1].mxu0  ;;  %v164_v11 = vadd.f32 %v1685_v9, %v1535_v8  ;;  %v371_v9 = vld [vmem:[%s2736_s9 + $0x20] sm:$0xff] }
  0xf5   :  { %v159_v12 = vadd.f32 %v1535_v8, %v158_v10  ;;  %v1835_v8 = vpack.c.bf16 %v378_v7, %v377_v6  ;;  %v372_v10 = vld [vmem:[%s2736_s9 + $0x28] sm:$0xff]  ;;  %v599_v6 = vsub.s32 0, %v598_v4 }
  0xf6   :  { %v168_v14 = vmax.f32 %v164_v11, 0.0  ;;  %v2371_v11 = vpack.c.bf16 %v372_v10, %v371_v9 }
  0xf7   :  { %v167_v13 = vmax.f32 %v159_v12, 0.0  ;;  %1837 = vmatpush3.bf16.xpose.msk.msra.mxu0 %vm2347_vm2, %v1835_v8  ;;  %v379_v12 = vmul.f32 %v371_v9, %v371_v9 }
  0xf8   :  { %v172_v16 = vsel %vm85_vm0, %v168_v14, 0.0  ;;  %1838 = vmatprep.subr.bf16.mxu0 %v2162_v60 }
  0xf9   :  { %v169_v15 = vsel %vm85_vm0, %v167_v13, 0.0 }
  0xfa   :  { %170 = vadd.xlane.f32.xlu0 %v169_v15  ;;  %v373_v15 = vld [vmem:[%s2736_s9 + $0x30] sm:$0xff] }
  0xfe   :  { %173 = vadd.xlane.f32.xlu0 %v172_v16  ;;  %v374_v16 = vld [vmem:[%s2736_s9 + $0x38] sm:$0xff] }
 0x187   :  { %v171_v17 = vpop.xlane.xlu0 %170 }
 0x188   :  { %v176_v18 = vmul.f32 0.03125, %v171_v17  ;;  %v2387_v17 = vpack.c.bf16 %v374_v16, %v373_v15 }
 0x18a   :  { %v178_v19 = vsub.f32 %v167_v13, %v176_v18  ;;  %v380_v13 = vmul.f32 %v372_v10, %v372_v10  ;;  %v381_v18 = vmul.f32 %v373_v15, %v373_v15 }
 0x18b   :  { %v174_v20 = vpop.xlane.xlu0 %173 }
 0x18c   :  { %v177_v21 = vmul.f32 0.03125, %v174_v20  ;;  %v180_v22 = vmul.f32 %v178_v19, %v178_v19 }
 0x18e   :  { %v179_v23 = vsub.f32 %v168_v14, %v177_v21  ;;  %v182_v24 = vsel %vm85_vm0, %v180_v22, 0.0  ;;  %v1839_v14 = vpack.c.bf16 %v380_v13, %v379_v12  ;;  %v2165_v21 = vmov 1.0  }
 0x18f   :  { %183 = vadd.xlane.f32.xlu1 %v182_v24 }
 0x190   :  { %v181_v25 = vmul.f32 %v179_v23, %v179_v23  ;;  %1841 = vmatpush3.bf16.xpose.msk.msra.mxu0 %vm2347_vm2, %v1839_v14 }
 0x191   :  { %1842 = vmatprep.subr.bf16.mxu0 %v2162_v60 }
 0x192   :  { %v185_v26 = vsel %vm85_vm0, %v181_v25, 0.0 }
 0x193   :  { %186 = vadd.xlane.f32.xlu1 %v185_v26 }
 0x21c   :  { %v184_v33 = vpop.xlane.xlu1 %183 }
 0x21d   :  { %v188_v34 = vmul.f32 0.03125, %v184_v33  ;;  %v358_v33 = vmul.f32 1.442695, %v357_v32 }
 0x21f   :  { %v190_v35 = vadd.f32 1e-05, %v188_v34 }
 0x220   :  { %v187_v36 = vpop.xlane.xlu1 %186 }
 0x221   :  { %1971 = vrsqrt.f32 %v190_v35  ;;  %v189_v37 = vmul.f32 0.03125, %v187_v36 }
 0x223   :  { %v191_v38 = vadd.f32 1e-05, %v189_v37 }
 0x225   :  { %1973 = vrsqrt.f32 %v191_v38 }
 0x226   :  { %1975 = vpow2.f32 %v358_v33 }
 0x22b   :  { %v1972_v39 = vpop.eup %1971 }
 0x22c   :  { %v194_v41 = vmul.f32 %v1972_v39, %v178_v19  ;;  %v382_v19 = vmul.f32 %v374_v16, %v374_v16 }
 0x22e   :  { %v202_v43 = vmul.f32 %v1538_v40, %v194_v41  ;;  %v1843_v20 = vpack.c.bf16 %v382_v19, %v381_v18 }
 0x22f   :  { %v1974_v44 = vpop.eup %1973 }
 0x230   :  { %v195_v45 = vmul.f32 %v1974_v44, %v179_v23  ;;  %v210_v46 = vadd.f32 %v1539_v42, %v202_v43  ;;  %1845 = vmatpush3.bf16.xpose.msk.msra.mxu0 %vm2347_vm2, %v1843_v20  ;;  %v1976_v34 = vpop.eup %1975 }
 0x231   :  { %1871 = vmatprep.subr.bf16.mxu0 %v2337_v63  ;;  %1942 = vpush %v1976_v34 }
 0x232   :  { %v203_v47 = vmul.f32 %v1538_v40, %v195_v45  ;;  %1694 = vmatprep.mubr.msk.f32.mxu1 %vm85_vm0, %v210_v46  ;;  %v1551_v45 = vld [vmem:[%s2731_s4 + $0x1] ss:$0 sm:$0xff] }
 0x234   :  { %v211_v48 = vadd.f32 %v1539_v42, %v203_v47  ;;  %v1550_v42 = vld [vmem:[%s2730_s3 + $0x1] ss:$0 sm:$0xff]  ;;  %s2167_s3 = smov 112  }
 0x236   :  { %1695 = vmatmul.mubr.msk.f32.vlgmr.msra.gmra.mrb[0].mxu1 %vm85_vm0, %v211_v48 }
 0x237   :  { %1851 = vmatpush3.bf16.xpose.msk.msra.mxu1 %vm2347_vm2, %v2337_v63  ;;  %1714 = vmatmul.mubr.msk.f32.vlgmr.msra.gmra.mrb[2].mxu0 %vm383_vm1, %v2165_v21 }
 0x238   :  { %1854 = vmatprep.subr.msk.bf16.mxu1 %vm2347_vm2, %v2351_v3  ;;  %1873 = vmatpush3.bf16.msra.mxu0 %v2337_v63 }
 0x239   :  { %1875 = vmatprep.subr.bf16.mxu0 %v2351_v3 }
 0x23c   :  { %1877 = vmatpush3.bf16.msra.mxu0 %v2351_v3 }
 0x23d   :  { %1879 = vmatprep.subr.bf16.mxu0 %v2371_v11 }
 0x23f   :  { %1857 = vmatpush3.bf16.xpose.msk.msra.mxu1 %vm2347_vm2, %v2351_v3 }
 0x240   :  { %1860 = vmatprep.subr.msk.bf16.mxu1 %vm2347_vm2, %v2371_v11  ;;  %1881 = vmatpush3.bf16.msra.mxu0 %v2371_v11 }
 0x241   :  { %1883 = vmatprep.subr.bf16.mxu0 %v2387_v17 }
 0x244   :  { %1885 = vmatpush3.bf16.msra.mxu0 %v2387_v17 }
 0x245   :  { %1911 = vmatprep.subr.bf16.mxu0 %v2337_v63 }
 0x247   :  { %1863 = vmatpush3.bf16.xpose.msk.msra.mxu1 %vm2347_vm2, %v2371_v11 }
 0x248   :  { %1866 = vmatprep.subr.msk.bf16.mxu1 %vm2347_vm2, %v2387_v17 }
 0x24f   :  { %1869 = vmatpush3.bf16.xpose.msk.msra.mxu1 %vm2347_vm2, %v2387_v17 }
 0x250   :  { %1888 = vmatprep.subr.msk.bf16.mxu1 %vm2347_vm2, %v2337_v63 }
 0x262   :  { %s1943_s0 = spop %1942 }
 0x263   :  { %s361_s17 = sadd.f32 1.0, %s1943_s0 }
 0x265   :  { %s362_s20 = smax.f32 %s2166_s18, %s361_s17 }
 0x309   :  { %v1696_v50 = vpop.f32.mrb[0].mxu1 }
 0x30a   :  { %v2319_v51 = vadd.f32 %v1696_v50, %v1547_v49  ;;  %v301_v52 = vpop.f32.mrb[1].mxu1  ;;  %v477_v48 = vpop.f32.mrb[2].mxu0 }
 0x30b   :  { %v2321_v53 = vadd.f32 %v1547_v49, %v301_v52  ;;  %v1715_v50 = vpop.f32.mrb[3].mxu0  ;;  %v600_v7 = vrot.slane %v477_v48, %v599_v6 }
 0x30c   :  { %v311_v54 = vmax.f32 %v2319_v51, 0.0 }
 0x30d   :  { %v310_v55 = vmax.f32 %v2321_v53, 0.0  ;;  %v363_v53 = vstv %s362_s20 }
 0x30e   :  { %v315_v56 = vsel %vm85_vm0, %v311_v54, 0.0 }
 0x30f   :  { %316 = vadd.xlane.f32.xlu1 %v315_v56  ;;  %v312_v57 = vsel %vm85_vm0, %v310_v55, 0.0 }
 0x310   :  { %313 = vadd.xlane.f32.xlu0 %v312_v57 }
 0x39c   :  { %v317_v22 = vpop.xlane.xlu1 %316 }
 0x39d   :  { %v319_v23 = vmul.f32 0.03125, %v317_v22  ;;  %v314_v24 = vpop.xlane.xlu0 %313 }
 0x39e   :  { %v318_v25 = vmul.f32 0.03125, %v314_v24 }
 0x39f   :  { %v321_v26 = vsub.f32 %v311_v54, %v319_v23 }
 0x3a0   :  { %v320_v27 = vsub.f32 %v310_v55, %v318_v25 }
 0x3a1   :  { %v323_v28 = vmul.f32 %v321_v26, %v321_v26 }
 0x3a2   :  { %v322_v29 = vmul.f32 %v320_v27, %v320_v27 }
 0x3a3   :  { %v327_v30 = vsel %vm85_vm0, %v323_v28, 0.0 }
 0x3a4   :  { %328 = vadd.xlane.f32.xlu1 %v327_v30  ;;  %v324_v31 = vsel %vm85_vm0, %v322_v29, 0.0 }
 0x3a5   :  { %325 = vadd.xlane.f32.xlu0 %v324_v31 }
 0x431   :  { %v329_v35 = vpop.xlane.xlu1 %328 }
 0x432   :  { %v331_v36 = vmul.f32 0.03125, %v329_v35  ;;  %v326_v37 = vpop.xlane.xlu0 %325 }
 0x433   :  { %v330_v38 = vmul.f32 0.03125, %v326_v37 }
 0x434   :  { %v333_v39 = vadd.f32 1e-05, %v331_v36 }
 0x435   :  { %v332_v40 = vadd.f32 1e-05, %v330_v38 }
 0x436   :  { %1977 = vrsqrt.f32 %v333_v39  ;;  %v2500_v39 = vand.u32 127, %v481_v2 }
 0x437   :  { %1979 = vrsqrt.f32 %v332_v40 }
 0x438   :  { %1981 = vrcp.f32 %v363_v53 }
 0x440   :  { %v1978_v41 = vpop.eup %1977 }
 0x441   :  { %v1980_v43 = vpop.eup %1979  ;;  %v337_v44 = vmul.f32 %v1978_v41, %v321_v26 }
 0x442   :  { %v336_v46 = vmul.f32 %v1980_v43, %v320_v27  ;;  %v1982_v56 = vpop.eup %1981 }
 0x443   :  { %v345_v47 = vmul.f32 %v1550_v42, %v337_v44  ;;  %1944 = vpush %v1982_v56 }
 0x444   :  { %v344_v49 = vmul.f32 %v1550_v42, %v336_v46 }
 0x445   :  { %v2430_v51 = vadd.f32 %v1551_v45, %v345_v47 }
 0x446   :  { %v2432_v52 = vadd.f32 %v1551_v45, %v344_v49 }
 0x447   :  { %355 = vst.msk [vmem:[#allocation10 + $0x8] sm:$0xff] %vm85_vm0, %v2430_v51  ;;  %813 = vrot.lane.b32.xlu1 %v2430_v51, %s2167_s3  ;;  %v589_v55 = vmul.f32 %v2430_v51, %v2430_v51 }
 0x448   :  { %354 = vst.msk [vmem:[#allocation10] sm:$0xff] %vm85_vm0, %v2432_v52  ;;  %811 = vrot.lane.b32.xlu0 %v2432_v52, %s2167_s3  ;;  %1732 = vmatprep.mubr.msk.f32.mxu1 %vm383_vm1, %v2432_v52  ;;  %v588_v54 = vmul.f32 %v2432_v52, %v2432_v52 }
 0x449   :  { %1733 = vmatmul.mubr.msk.f32.vlgmr.msra.gmra.mrb[2].mxu1 %vm383_vm1, %v2430_v51  ;;  %v593_v58 = vsel %vm383_vm1, %v589_v55, 0.0 }
 0x44a   :  { %1891 = vmatpush3.bf16.xpose.msk.msra.mxu1 %vm2347_vm2, %v2337_v63  ;;  %v590_v57 = vsel %vm383_vm1, %v588_v54, 0.0 }
 0x44b   :  { %896 = vrot.lane.b32.xlu1 %v588_v54, %s2167_s3  ;;  %1894 = vmatprep.subr.msk.bf16.mxu1 %vm2347_vm2, %v2351_v3 }
 0x44f   :  { %898 = vrot.lane.b32.xlu1 %v589_v55, %s2167_s3 }
 0x452   :  { %1897 = vmatpush3.bf16.xpose.msk.msra.mxu1 %vm2347_vm2, %v2351_v3 }
 0x453   :  { %1900 = vmatprep.subr.msk.bf16.mxu1 %vm2347_vm2, %v2371_v11 }
 0x45a   :  { %1903 = vmatpush3.bf16.xpose.msk.msra.mxu1 %vm2347_vm2, %v2371_v11 }
 0x45b   :  { %1906 = vmatprep.subr.msk.bf16.mxu1 %vm2347_vm2, %v2387_v17 }
 0x462   :  { %1909 = vmatpush3.bf16.xpose.msk.msra.mxu1 %vm2347_vm2, %v2387_v17 }
 0x467   :  { %591 = vadd.xlane.f32.xlu0 %v590_v57 }
 0x473   :  { %594 = vadd.xlane.f32.xlu1 %v593_v58 }
 0x474   :  { %s2479_s4 = spop %1944 }
 0x475   :  { %s366_s21 = smul.f32 0.5, %s2479_s4 }
 0x477   :  { %s596_s22 = ssub.f32 0.0, %s366_s21 }
 0x479   :  { %v607_v16 = vstv %s596_s22 }
 0x4b9   :  { %v814_v59 = vpop.permute.xlu1 %813 }
 0x4ba   :  { %v812_v60 = vpop.permute.xlu0 %811 }
 0x4bb   :  { %1770 = vmatprep.mubr.msk.f32.mxu1 %vm383_vm1, %v812_v60 }
 0x4bc   :  { %1771 = vmatmul.mubr.msk.f32.vlgmr.msra.gmra.mrb[4].mxu1 %vm383_vm1, %v814_v59 }
 0x4bd   :  { %v897_v61 = vpop.permute.xlu1 %896 }
 0x4be   :  { %v902_v62 = vsel %vm383_vm1, %v897_v61, 0.0 }
 0x4bf   :  { %903 = vadd.xlane.f32.xlu0 %v902_v62 }
 0x4c1   :  { %v899_v0 = vpop.permute.xlu1 %898 }
 0x4c2   :  { %v905_v1 = vsel %vm383_vm1, %v899_v0, 0.0 }
 0x4c3   :  { %906 = vadd.xlane.f32.xlu0 %v905_v1 }
 0x4f4   :  { %v592_v9 = vpop.xlane.xlu0 %591 }
 0x4f5   :  { %v601_v15 = vadd.f32 %v600_v7, %v592_v9 }
 0x500   :  { %v595_v8 = vpop.xlane.xlu1 %594 }
 0x501   :  { %v602_v12 = vadd.f32 %v600_v7, %v595_v8 }
 0x51c   :  { %v1734_v10 = vpop.f32.mrb[2].mxu1 }
 0x51d   :  { %v604_v13 = vmul.f32 2.0, %v1734_v10  ;;  %v579_v14 = vpop.f32.mrb[3].mxu1 }
 0x51e   :  { %v603_v18 = vmul.f32 2.0, %v579_v14 }
 0x51f   :  { %v606_v19 = vsub.f32 %v602_v12, %v604_v13 }
 0x520   :  { %v605_v20 = vsub.f32 %v601_v15, %v603_v18 }
 0x521   :  { %v2484_v21 = vmul.f32 %v607_v16, %v606_v19 }
 0x522   :  { %v2486_v22 = vmul.f32 %v607_v16, %v605_v20 }
 0x523   :  { %v614_v23 = vsel %vm610_vm4, %v2484_v21, -inf }
 0x524   :  { %615 = vmax.xlane.f32.xlu1 %v614_v23  ;;  %v611_v24 = vsel %vm610_vm4, %v2486_v22, -inf }
 0x525   :  { %612 = vmax.xlane.f32.xlu0 %v611_v24 }
 0x54c   :  { %v904_v25 = vpop.xlane.xlu0 %903 }
 0x54d   :  { %v908_v31 = vadd.f32 %v904_v25, %v600_v7 }
 0x550   :  { %v907_v26 = vpop.xlane.xlu0 %906 }
 0x551   :  { %v909_v28 = vadd.f32 %v907_v26, %v600_v7 }
 0x58f   :  { %v1772_v27 = vpop.f32.mrb[4].mxu1 }
 0x590   :  { %v911_v29 = vmul.f32 2.0, %v1772_v27  ;;  %v885_v30 = vpop.f32.mrb[5].mxu1 }
 0x591   :  { %v910_v32 = vmul.f32 2.0, %v885_v30 }
 0x592   :  { %v913_v33 = vsub.f32 %v909_v28, %v911_v29 }
 0x593   :  { %v912_v34 = vsub.f32 %v908_v31, %v910_v32 }
 0x594   :  { %v2492_v35 = vmul.f32 %v913_v33, %v607_v16 }
 0x595   :  { %v2494_v36 = vmul.f32 %v912_v34, %v607_v16 }
 0x596   :  { %v919_v37 = vsel %vm610_vm4, %v2492_v35, -inf }
 0x597   :  { %920 = vmax.xlane.f32.xlu1 %v919_v37  ;;  %v916_v38 = vsel %vm610_vm4, %v2494_v36, -inf }
 0x598   :  { %917 = vmax.xlane.f32.xlu0 %v916_v38 }
 0x5b1   :  { %v2502_v40 = vpop.xlane.xlu1 %615 }
 0x5b2   :  { %vm663_vm5 = vcmp.ge.f32.partialorder %v2484_v21, %v2502_v40  ;;  %v2506_v41 = vpop.xlane.xlu0 %612 }
 0x5b3   :  { %v665_v42 = vsel %vm663_vm5, %v2500_v39, 64  ;;  %vm662_vm6 = vcmp.ge.f32.partialorder %v2486_v22, %v2506_v41  ;;  %vm65_vm5 = vcmask 0  }
 0x5b4   :  { %v664_v43 = vsel %vm662_vm6, %v2500_v39, 64  ;;  %v681_v44 = vsel %vm610_vm4, %v665_v42, 2147483647  ;;  %66 = vst.msk [vmem:[#allocation2] sm:$0x1] %vm65_vm5, %v2164_v5 }
 0x5b5   :  { %v683_v45 = vshra.s32 %v681_v44, 16  ;;  %v666_v46 = vsel %vm610_vm4, %v664_v43, 2147483647  ;;  %v682_v62 = vand.u32 65535, %v681_v44  ;;  %67 = vst.msk [vmem:[#allocation3] sm:$0x1] %vm65_vm5, %v2164_v5 }
 0x5b6   :  { %v668_v47 = vshra.s32 %v666_v46, 16  ;;  %v667_v0 = vand.u32 65535, %v666_v46 }
 0x5b7   :  { %v685_v48 = vcvt.s32.f32 %v683_v45  ;;  %v684_v2 = vcvt.s32.f32 %v682_v62 }
 0x5b8   :  { %v670_v49 = vcvt.s32.f32 %v668_v47  ;;  %v669_v6 = vcvt.s32.f32 %v667_v0 }
 0x5b9   :  { %686 = vmin.xlane.f32.xlu1 %v685_v48 }
 0x5ba   :  { %671 = vmin.xlane.f32.xlu0 %v670_v49 }
 0x624   :  { %v2514_v50 = vpop.xlane.xlu1 %920 }
 0x625   :  { %vm967_vm7 = vcmp.ge.f32.partialorder %v2492_v35, %v2514_v50  ;;  %v2518_v53 = vpop.xlane.xlu0 %917 }
 0x626   :  { %v969_v54 = vsel %vm967_vm7, %v2500_v39, 64  ;;  %vm966_vm8 = vcmp.ge.f32.partialorder %v2494_v36, %v2518_v53 }
 0x627   :  { %v968_v55 = vsel %vm966_vm8, %v2500_v39, 64  ;;  %v985_v56 = vsel %vm610_vm4, %v969_v54, 2147483647 }
 0x628   :  { %v987_v57 = vshra.s32 %v985_v56, 16  ;;  %v970_v58 = vsel %vm610_vm4, %v968_v55, 2147483647  ;;  %v986_v9 = vand.u32 65535, %v985_v56 }
 0x629   :  { %v972_v59 = vshra.s32 %v970_v58, 16  ;;  %v971_v10 = vand.u32 65535, %v970_v58 }
 0x62a   :  { %v989_v60 = vcvt.s32.f32 %v987_v57  ;;  %v988_v13 = vcvt.s32.f32 %v986_v9  ;;  %v1146_v9 = vld [vmem:[#allocation6] sm:$0xff] }
 0x62b   :  { %v974_v61 = vcvt.s32.f32 %v972_v59  ;;  %v973_v15 = vcvt.s32.f32 %v971_v10  ;;  %v1147_v10 = vld [vmem:[#allocation6 + $0x8] sm:$0xff] }
 0x62c   :  { %990 = vmin.xlane.f32.xlu1 %v989_v60 }
 0x62d   :  { %975 = vmin.xlane.f32.xlu0 %v974_v61 }
 0x646   :  { %v687_v1 = vpop.xlane.xlu1 %686 }
 0x647   :  { %v672_v4 = vpop.xlane.xlu0 %671  ;;  %vm688_vm9 = vcmp.eq.f32.partialorder %v685_v48, %v687_v1  ;;  %v693_v19 = vcvt.f32.s32 %v687_v1 }
 0x648   :  { %v689_v7 = vsel %vm688_vm9, %v684_v2, inf  ;;  %vm673_vm10 = vcmp.eq.f32.partialorder %v670_v49, %v672_v4  ;;  %v678_v20 = vcvt.f32.s32 %v672_v4 }
 0x649   :  { %690 = vmin.xlane.f32.xlu1 %v689_v7  ;;  %v674_v8 = vsel %vm673_vm10, %v669_v6, inf  ;;  %v694_v24 = vshll.u32 %v693_v19, 16  ;;  %v1142_v6 = vld [vmem:[#allocation4] sm:$0x1] }
 0x64a   :  { %675 = vmin.xlane.f32.xlu0 %v674_v8  ;;  %v679_v27 = vshll.u32 %v678_v20, 16 }
 0x6b9   :  { %v991_v12 = vpop.xlane.xlu1 %990 }
 0x6ba   :  { %v976_v14 = vpop.xlane.xlu0 %975  ;;  %vm992_vm11 = vcmp.eq.f32.partialorder %v989_v60, %v991_v12  ;;  %v997_v38 = vcvt.f32.s32 %v991_v12  ;;  %v1148_v12 = vld [vmem:[#allocation6 + $0x10] sm:$0xff] }
 0x6bb   :  { %v993_v16 = vsel %vm992_vm11, %v988_v13, inf  ;;  %vm977_vm12 = vcmp.eq.f32.partialorder %v974_v61, %v976_v14  ;;  %v982_v42 = vcvt.f32.s32 %v976_v14  ;;  %v1926_v13 = vpack.c.bf16 %v1147_v10, %v1146_v9  ;;  %v1149_v14 = vld [vmem:[#allocation6 + $0x18] sm:$0xff] }
 0x6bc   :  { %994 = vmin.xlane.f32.xlu1 %v993_v16  ;;  %v978_v18 = vsel %vm977_vm12, %v973_v15, inf  ;;  %v998_v44 = vshll.u32 %v997_v38, 16  ;;  %v1930_v15 = vpack.c.bf16 %v1149_v14, %v1148_v12  ;;  %v1285_v14 = vld [vmem:[#allocation6 + $0x20] sm:$0xff] }
 0x6bd   :  { %979 = vmin.xlane.f32.xlu0 %v978_v18 }
 0x6d6   :  { %v691_v23 = vpop.xlane.xlu1 %690 }
 0x6d7   :  { %v692_v25 = vcvt.f32.s32 %v691_v23  ;;  %v676_v26 = vpop.xlane.xlu0 %675 }
 0x6d8   :  { %v677_v28 = vcvt.f32.s32 %v676_v26 }
 0x6d9   :  { %v695_v29 = vadd.s32 %v694_v24, %v692_v25 }
 0x6da   :  { %v680_v30 = vadd.s32 %v679_v27, %v677_v28 }
 0x6db   :  { %vm697_vm13 = vcmp.eq.s32.totalorder %v2500_v39, %v695_v29 }
 0x6dc   :  { %v1572_v31 = vsel %vm697_vm13, 1.0, %v2164_v5  ;;  %vm696_vm14 = vcmp.eq.s32.totalorder %v2500_v39, %v680_v30 }
 0x6dd   :  { %v1571_v32 = vsel %vm696_vm14, 1.0, %v2164_v5  ;;  %v802_v33 = vsel %vm610_vm4, %v1572_v31, 0.0 }
 0x6de   :  { %1751 = vmatprep.mubr.msk.f32.mxu0 %vm610_vm4, %v1571_v32  ;;  %v801_v34 = vsel %vm610_vm4, %v1571_v32, 0.0 }
 0x6df   :  { %v803_v37 = vadd.f32 %v802_v33, %v801_v34  ;;  %1752 = vmatmul.mubr.msk.f32.vlgmr.msra.gmra.mrb[4].mxu0 %vm610_vm4, %v1572_v31  ;;  %v1589_v34 = vld [vmem:[%s2733_s6] ss:$0 sm:$0xff] }
 0x6e0   :  { %1913 = vmatpush3.bf16.msra.mxu0 %v2337_v63  ;;  %v983_v63 = vshll.u32 %v982_v42, 16 }
 0x6e1   :  { %1915 = vmatprep.subr.bf16.mxu0 %v2351_v3  ;;  %v804_v45 = vrot.slane %v803_v37, 4 }
 0x6e4   :  { %1917 = vmatpush3.bf16.msra.mxu0 %v2351_v3  ;;  %v805_v3 = vadd.f32 %v804_v45, %v803_v37 }
 0x6e5   :  { %1919 = vmatprep.subr.bf16.mxu0 %v2371_v11 }
 0x6e6   :  { %v806_v57 = vrot.slane %v805_v3, 2 }
 0x6e8   :  { %1921 = vmatpush3.bf16.msra.mxu0 %v2371_v11  ;;  %v807_v60 = vadd.f32 %v806_v57, %v805_v3 }
 0x6e9   :  { %1923 = vmatprep.subr.bf16.mxu0 %v2387_v17 }
 0x6ea   :  { %v808_v0 = vrot.slane %v807_v60, 1 }
 0x6ec   :  { %1925 = vmatpush3.bf16.msra.mxu0 %v2387_v17 }
 0x6ed   :  { %1927 = vmatprep.subr.bf16.mxu0 %v1926_v13 }
 0x749   :  { %v995_v43 = vpop.xlane.xlu1 %994 }
 0x74a   :  { %v996_v46 = vcvt.f32.s32 %v995_v43  ;;  %v980_v47 = vpop.xlane.xlu0 %979 }
 0x74b   :  { %v981_v48 = vcvt.f32.s32 %v980_v47 }
 0x74c   :  { %v999_v49 = vadd.s32 %v998_v44, %v996_v46 }
 0x74d   :  { %v984_v54 = vadd.s32 %v983_v63, %v981_v48  ;;  %v618_v63 = vsub.f32 %v2484_v21, %v2502_v40  ;;  %v617_v48 = vsub.f32 %v2486_v22, %v2506_v41 }
 0x74e   :  { %vm1001_vm2 = vcmp.eq.s32.totalorder %v2500_v39, %v999_v49 }
 0x74f   :  { %v1586_v11 = vsel %vm1001_vm2, 1.0, %v2164_v5  ;;  %vm1000_vm3 = vcmp.eq.s32.totalorder %v2500_v39, %v984_v54  ;;  %v809_v39 = vadd.f32 %v808_v0, %v807_v60  ;;  %v621_v49 = vmul.f32 1.442695, %v618_v63 }
 0x750   :  { %v1585_v17 = vsel %vm1000_vm3, 1.0, %v2164_v5  ;;  %v1122_v55 = vsel %vm610_vm4, %v1586_v11, 0.0  ;;  %v923_v54 = vsub.f32 %v2492_v35, %v2514_v50  ;;  %v619_v3 = vmul.f32 1.442695, %v617_v48 }
 0x751   :  { %1789 = vmatprep.mubr.msk.f32.mxu0 %vm610_vm4, %v1585_v17  ;;  %v1121_v56 = vsel %vm610_vm4, %v1585_v17, 0.0  ;;  %1983 = vpow2.f32 %v621_v49 }
 0x752   :  { %v1123_v58 = vadd.f32 %v1122_v55, %v1121_v56  ;;  %1790 = vmatmul.mubr.msk.f32.vlgmr.msra.gmra.mrb[6].mxu0 %vm610_vm4, %v1586_v11  ;;  %v922_v11 = vsub.f32 %v2494_v36, %v2518_v53  ;;  %v926_v17 = vmul.f32 1.442695, %v923_v54  ;;  %1985 = vpow2.f32 %v619_v3 }
 0x753   :  { %1929 = vmatpush3.bf16.msra.mxu0 %v1926_v13 }
 0x754   :  { %v1124_v59 = vrot.slane %v1123_v58, 4  ;;  %1931 = vmatprep.subr.bf16.mxu0 %v1930_v15  ;;  %v924_v55 = vmul.f32 1.442695, %v922_v11  ;;  %1987 = vpow2.f32 %v926_v17 }
 0x756   :  { %v1125_v61 = vadd.f32 %v1124_v59, %v1123_v58  ;;  %1989 = vpow2.f32 %v924_v55 }
 0x757   :  { %1933 = vmatpush3.bf16.msra.mxu0 %v1930_v15  ;;  %v1286_v15 = vld [vmem:[#allocation6 + $0x28] sm:$0xff] }
 0x758   :  { %v1126_v62 = vrot.slane %v1125_v61, 2 }
 0x75a   :  { %v1127_v1 = vadd.f32 %v1126_v62, %v1125_v61 }
 0x75b   :  { %v1984_v50 = vpop.eup %1983 }
 0x75c   :  { %v1128_v2 = vrot.slane %v1127_v1, 1  ;;  %v1986_v53 = vpop.eup %1985  ;;  %v626_v60 = vsel %vm610_vm4, %v1984_v50, 0.0 }
 0x75d   :  { %v623_v62 = vsel %vm610_vm4, %v1986_v53, 0.0 }
 0x75e   :  { %v1129_v4 = vadd.f32 %v1128_v2, %v1127_v1  ;;  %v1988_v61 = vpop.eup %1987  ;;  %v636_v2 = vmul.f32 %v1984_v50, %v618_v63 }
 0x75f   :  { %v931_v1 = vsel %vm610_vm4, %v1988_v61, 0.0 }
 0x760   :  { %v1130_v7 = vadd.f32 %v1129_v4, %v809_v39  ;;  %v1990_v0 = vpop.eup %1989  ;;  %v635_v4 = vmul.f32 %v1986_v53, %v617_v48  ;;  %v1597_v53 = vld [vmem:[%s2733_s6 + $0x1] ss:$0 sm:$0xff]  ;;  %s2169_s6 = smov [#allocation10]  }
 0x761   :  { %v928_v39 = vsel %vm610_vm4, %v1990_v0, 0.0  ;;  %v940_v9 = vmul.f32 %v1990_v0, %v922_v11  ;;  %s1477_s2 = sshll.u32 %s2169_s6, 4  ;;  %s1478_s2 = int_to_ptr.vmem [resolvable:$true] %s1477_s2 }
 0x762   :  { %v1143_v8 = vadd.f32 %v1142_v6, %v1130_v7  ;;  %v640_v6 = vsel %vm610_vm4, %v636_v2, 0.0  ;;  %v941_v7 = vmul.f32 %v1988_v61, %v923_v54  ;;  %s2041_s30 = scalar_lea.vmem %s1478_s2, 256  ;;  %p2046_p9 = scmp.lt.s32.totalorder %s1478_s2, %s1478_s2 }
 0x763   :  { %v942_v12 = vsel %vm610_vm4, %v940_v9, 0.0  ;;  %p2042_p8 = scmp.ne.s32.totalorder %s1478_s2, %s2041_s30  ;;  %p2047_p10 = scmp.lt.s32.totalorder %s2041_s30, %s2041_s30 }
 0x764   :  { %1145 = vst.msk [vmem:[#allocation4] sm:$0x1] %vm68_vm15, %v1143_v8  ;;  %v637_v8 = vsel %vm610_vm4, %v635_v4, 0.0  ;;  %v945_v10 = vsel %vm610_vm4, %v941_v7, 0.0  ;;  %vm647_vm4 = vcmask 7168  }
 0x765   :  { %p2048_p11 = por %p2047_p10, %p2046_p9 }
 0x767   :  { %p2049_p12 = pnand %p2048_p11, %p2042_p8 }
 0x76b   :  { %v1439_v49 = vld [vmem:[#allocation4] sm:$0x1] }
 0x76c   :  { %v1440_v54 = vmul.f32 0.03125, %v1439_v49 }
 0x76e   :  { %v1441_v17 = vadd.f32 1e-07, %v1440_v54 }
 0x7b2   :  { %v1753_v16 = vpop.f32.mrb[4].mxu0 }
 0x7b3   :  { %v784_v18 = vsub.f32 %v2430_v51, %v1753_v16  ;;  %v774_v19 = vpop.f32.mrb[5].mxu0 }
 0x7b4   :  { %v783_v20 = vsub.f32 %v2432_v52, %v774_v19 }
 0x7b5   :  { %v786_v23 = vmul.f32 %v784_v18, %v784_v18  ;;  %v1934_v18 = vpack.c.bf16 %v1286_v15, %v1285_v14 }
 0x7b6   :  { %v785_v24 = vmul.f32 %v783_v20, %v783_v20  ;;  %v1287_v20 = vld [vmem:[#allocation6 + $0x30] sm:$0xff] }
 0x7b7   :  { %v788_v25 = vsel %vm383_vm1, %v786_v23, 0.0  ;;  %1935 = vmatprep.subr.bf16.mxu1 %v1934_v18  ;;  %v1288_v23 = vld [vmem:[#allocation6 + $0x38] sm:$0xff] }
 0x7b8   :  { %v787_v26 = vsel %vm383_vm1, %v785_v24, 0.0  ;;  %1937 = vmatpush3.bf16.msra.mxu1 %v1934_v18  ;;  %v1938_v24 = vpack.c.bf16 %v1288_v23, %v1287_v20 }
 0x7b9   :  { %v2556_v27 = vadd.f32 %v788_v25, %v787_v26 }
 0x7ba   :  { %1939 = vmatprep.subr.bf16.mxu1 %v1938_v24 }
 0x7bc   :  { %1941 = vmatpush3.bf16.msra.mxu1 %v1938_v24 }
 0x825   :  { %v1791_v28 = vpop.f32.mrb[6].mxu0 }
 0x826   :  { %1091 = vrot.lane.b32.xlu1 %v1791_v28, %s2168_s23  ;;  %v1078_v29 = vpop.f32.mrb[7].mxu0 }
 0x827   :  { %1089 = vrot.lane.b32.xlu0 %v1078_v29, %s2168_s23 }
 0x898   :  { %v2558_v30 = vpop.permute.xlu1 %1091 }
 0x899   :  { %v1132_v31 = vsel %vm383_vm1, %v1753_v16, %v2558_v30  ;;  %v2562_v32 = vpop.permute.xlu0 %1089  ;;  %v1096_v13 = vsub.f32 %v2430_v51, %v2558_v30 }
 0x89a   :  { %1134 = vst.msk [vmem:[#allocation12 + $0x8] sm:$0xff] %vm85_vm0, %v1132_v31  ;;  %v1131_v33 = vsel %vm383_vm1, %v774_v19, %v2562_v32  ;;  %v1095_v19 = vsub.f32 %v2432_v52, %v2562_v32  ;;  %v1592_v32 = vld [vmem:[%s2734_s7] ss:$0 sm:$0xff] }
 0x89b   :  { %1133 = vst.msk [vmem:[#allocation12] sm:$0xff] %vm85_vm0, %v1131_v33  ;;  %1800 = vmatprep.mubr.msk.f32.mxu0 %vm85_vm0, %v1131_v33  ;;  %v1098_v16 = vmul.f32 %v1096_v13, %v1096_v13 }
 0x89c   :  { %1801 = vmatmul.mubr.msk.f32.vlgmr.msra.gmra.mrb[8].mxu0 %vm85_vm0, %v1132_v31  ;;  %v1097_v25 = vmul.f32 %v1095_v19, %v1095_v19 }
 0x96f   :  { %v1802_v37 = vpop.f32.mrb[8].mxu0 }
 0x970   :  { %v1237_v38 = vadd.f32 %v1802_v37, %v1589_v34  ;;  %v1231_v42 = vpop.f32.mrb[9].mxu0 }
 0x971   :  { %v1232_v43 = vadd.f32 %v1589_v34, %v1231_v42 }
 0x972   :  { %v1241_v44 = vmax.f32 %v1237_v38, 0.0  ;;  %v1593_v38 = vld [vmem:[%s2735_s8] ss:$0 sm:$0xff] }
 0x973   :  { %v1240_v45 = vmax.f32 %v1232_v43, 0.0 }
 0x974   :  { %v1245_v46 = vsel %vm85_vm0, %v1241_v44, 0.0 }
 0x975   :  { %1246 = vadd.xlane.f32.xlu0 %v1245_v46  ;;  %v1242_v47 = vsel %vm85_vm0, %v1240_v45, 0.0 }
 0x976   :  { %1243 = vadd.xlane.f32.xlu1 %v1242_v47 }
 0xa02   :  { %v1247_v56 = vpop.xlane.xlu0 %1246 }
 0xa03   :  { %v1249_v57 = vmul.f32 0.03125, %v1247_v56  ;;  %v1244_v58 = vpop.xlane.xlu1 %1243 }
 0xa04   :  { %v1248_v21 = vmul.f32 0.03125, %v1244_v58 }
 0xa05   :  { %v1251_v40 = vsub.f32 %v1241_v44, %v1249_v57 }
 0xa06   :  { %v1250_v22 = vsub.f32 %v1240_v45, %v1248_v21 }
 0xa07   :  { %v1253_v41 = vmul.f32 %v1251_v40, %v1251_v40 }
 0xa08   :  { %v1252_v59 = vmul.f32 %v1250_v22, %v1250_v22 }
 0xa09   :  { %v1257_v35 = vsel %vm85_vm0, %v1253_v41, 0.0 }
 0xa0a   :  { %1258 = vadd.xlane.f32.xlu1 %v1257_v35  ;;  %v1254_v36 = vsel %vm85_vm0, %v1252_v59, 0.0 }
 0xa0b   :  { %1255 = vadd.xlane.f32.xlu0 %v1254_v36 }
 0xa0e   :  { %627 = vadd.xlane.f32.xlu1 %v626_v60 }
 0xa0f   :  { %624 = vadd.xlane.f32.xlu0 %v623_v62 }
 0xa12   :  { %932 = vadd.xlane.f32.xlu1 %v931_v1 }
 0xa13   :  { %929 = vadd.xlane.f32.xlu0 %v928_v39 }
 0xa16   :  { %641 = vadd.xlane.f32.xlu1 %v640_v6 }
 0xa17   :  { %638 = vadd.xlane.f32.xlu0 %v637_v8 }
 0xa1a   :  { %946 = vadd.xlane.f32.xlu1 %v945_v10 }
 0xa1b   :  { %943 = vadd.xlane.f32.xlu0 %v942_v12 }
 0xa2b   :  { %1103 = vrot.lane.b32.xlu1 %v1098_v16, %s2167_s3 }
 0xa31   :  { %1101 = vrot.lane.b32.xlu0 %v1097_v25, %s2167_s3 }
 0xa97   :  { %v1259_v51 = vpop.xlane.xlu1 %1258 }
 0xa98   :  { %v1261_v26 = vmul.f32 0.03125, %v1259_v51  ;;  %v1256_v28 = vpop.xlane.xlu0 %1255 }
 0xa99   :  { %v1260_v29 = vmul.f32 0.03125, %v1256_v28 }
 0xa9a   :  { %v1263_v30 = vadd.f32 1e-05, %v1261_v26 }
 0xa9b   :  { %v1262_v31 = vadd.f32 1e-05, %v1260_v29  ;;  %v628_v46 = vpop.xlane.xlu1 %627 }
 0xa9c   :  { %1991 = vrsqrt.f32 %v1263_v30  ;;  %v625_v47 = vpop.xlane.xlu0 %624 }
 0xa9d   :  { %1993 = vrsqrt.f32 %v1262_v31 }
 0xa9e   :  { %1995 = vrcp.f32 %v628_v46 }
 0xa9f   :  { %1997 = vlog2.f32 %v628_v46  ;;  %v933_v63 = vpop.xlane.xlu1 %932 }
 0xaa0   :  { %1999 = vrcp.f32 %v625_v47  ;;  %v930_v48 = vpop.xlane.xlu0 %929 }
 0xaa1   :  { %2001 = vlog2.f32 %v625_v47 }
 0xaa2   :  { %2003 = vrcp.f32 %v933_v63 }
 0xaa3   :  { %2005 = vlog2.f32 %v933_v63  ;;  %v642_v57 = vpop.xlane.xlu1 %641 }
 0xaa4   :  { %2007 = vrcp.f32 %v930_v48  ;;  %v639_v58 = vpop.xlane.xlu0 %638 }
 0xaa5   :  { %2009 = vlog2.f32 %v930_v48 }
 0xaa6   :  { %v1992_v52 = vpop.eup %1991  ;;  %2011 = vlog2.f32 %v1441_v17 }
 0xaa7   :  { %v1994_v33 = vpop.eup %1993  ;;  %v1267_v34 = vmul.f32 %v1992_v52, %v1251_v40  ;;  %v947_v60 = vpop.xlane.xlu1 %946 }
 0xaa8   :  { %v1266_v37 = vmul.f32 %v1994_v33, %v1250_v22  ;;  %v1996_v3 = vpop.eup %1995  ;;  %v944_v1 = vpop.xlane.xlu0 %943 }
 0xaa9   :  { %v1275_v42 = vmul.f32 %v1592_v32, %v1267_v34  ;;  %v1998_v11 = vpop.eup %1997  ;;  %v644_v41 = vmul.f32 %v1996_v3, %v642_v57 }
 0xaaa   :  { %v1274_v43 = vmul.f32 %v1592_v32, %v1266_v37  ;;  %v2000_v55 = vpop.eup %1999  ;;  %v634_v22 = vmul.f32 0.6931472, %v1998_v11 }
 0xaab   :  { %v1283_v45 = vadd.f32 %v1593_v38, %v1275_v42  ;;  %v2002_v56 = vpop.eup %2001  ;;  %v643_v35 = vmul.f32 %v2000_v55, %v639_v58  ;;  %v1104_v23 = vpop.permute.xlu1 %1103 }
 0xaac   :  { %v1282_v44 = vadd.f32 %v1593_v38, %v1274_v43  ;;  %v2004_v21 = vpop.eup %2003  ;;  %v632_v59 = vmul.f32 0.6931472, %v2002_v56  ;;  %v646_v61 = vsub.f32 %v644_v41, %v634_v22  ;;  %v1102_v24 = vpop.permute.xlu0 %1101  ;;  %v1108_v29 = vsel %vm383_vm1, %v1104_v23, 0.0 }
 0xaad   :  { %v2006_v40 = vpop.eup %2005  ;;  %v949_v0 = vmul.f32 %v2004_v21, %v947_v60  ;;  %v1107_v30 = vsel %vm383_vm1, %v1102_v24, 0.0 }
 0xaae   :  { %1811 = vmatprep.mubr.msk.f32.mxu1 %vm85_vm0, %v1282_v44  ;;  %v2008_v50 = vpop.eup %2007  ;;  %v645_v62 = vsub.f32 %v643_v35, %v632_v59  ;;  %v939_v39 = vmul.f32 0.6931472, %v2006_v40  ;;  %v649_v13 = vsel %vm647_vm4, %v646_v61, 0.0  ;;  %v1109_v52 = vadd.f32 %v1108_v29, %v1107_v30 }
 0xaaf   :  { %1812 = vmatmul.mubr.msk.f32.vlgmr.msra.gmra.mrb[6].mxu1 %vm85_vm0, %v1283_v45  ;;  %v2010_v36 = vpop.eup %2009  ;;  %v948_v6 = vmul.f32 %v2008_v50, %v944_v1 }
 0xab0   :  { %v937_v4 = vmul.f32 0.6931472, %v2010_v36  ;;  %v2012_v14 = vpop.eup %2011  ;;  %v951_v15 = vsub.f32 %v949_v0, %v939_v39  ;;  %v648_v19 = vsel %vm647_vm4, %v645_v62, 0.0 }
 0xab1   :  { %v650_v25 = vadd.f32 %v649_v13, %v648_v19  ;;  %v1443_v28 = vmul.f32 0.6931472, %v2012_v14 }
 0xab2   :  { %v950_v16 = vsub.f32 %v948_v6, %v937_v4  ;;  %v953_v26 = vsel %vm647_vm4, %v951_v15, 0.0 }
 0xab3   :  { %v1444_v32 = vmul.f32 %v1443_v28, %v1440_v54 }
 0xab4   :  { %v952_v51 = vsel %vm647_vm4, %v950_v16, 0.0 }
 0xab5   :  { %v954_v31 = vadd.f32 %v953_v26, %v952_v51  ;;  %v1445_v33 = vsel %vm68_vm15, %v1444_v32, 0.0 }
 0xb82   :  { %v1813_v2 = vpop.f32.mrb[6].mxu1 }
 0xb83   :  { %v1379_v7 = vadd.f32 %v1813_v2, %v1597_v53  ;;  %v1373_v8 = vpop.f32.mrb[7].mxu1 }
 0xb84   :  { %v1374_v9 = vadd.f32 %v1597_v53, %v1373_v8 }
 0xb85   :  { %v1383_v10 = vmax.f32 %v1379_v7, 0.0 }
 0xb86   :  { %v1382_v12 = vmax.f32 %v1374_v9, 0.0 }
 0xb87   :  { %v1387_v18 = vsel %vm85_vm0, %v1383_v10, 0.0 }
 0xb88   :  { %1388 = vadd.xlane.f32.xlu0 %v1387_v18  ;;  %v1384_v20 = vsel %vm85_vm0, %v1382_v12, 0.0 }
 0xb89   :  { %1385 = vadd.xlane.f32.xlu1 %v1384_v20 }
 0xb8c   :  { %651 = vadd.xlane.f32.xlu0 %v650_v25 }
 0xb8d   :  { %790 = vadd.xlane.f32.xlu1 %v2556_v27 }
 0xb90   :  { %955 = vadd.xlane.f32.xlu0 %v954_v31 }
 0xb91   :  { %1110 = vadd.xlane.f32.xlu1 %v1109_v52 }
 0xb94   :  { %1446 = vadd.xlane.f32.xlu0 %v1445_v33 }
 0xc15   :  { %v1389_v34 = vpop.xlane.xlu0 %1388 }
 0xc16   :  { %v1391_v37 = vmul.f32 0.03125, %v1389_v34  ;;  %v1386_v38 = vpop.xlane.xlu1 %1385 }
 0xc17   :  { %v1390_v42 = vmul.f32 0.03125, %v1386_v38 }
 0xc18   :  { %v2624_v27 = vsub.f32 %v1383_v10, %v1391_v37 }
 0xc19   :  { %v2626_v43 = vsub.f32 %v1382_v12, %v1390_v42  ;;  %v652_v44 = vpop.xlane.xlu0 %651 }
 0xc1a   :  { %v653_v45 = vrot.slane %v652_v44, 4  ;;  %v791_v46 = vpop.xlane.xlu1 %790  ;;  %v1395_v47 = vmul.f32 %v2624_v27, %v2624_v27 }
 0xc1b   :  { %v792_v63 = vrot.slane %v791_v46, 4  ;;  %v1394_v48 = vmul.f32 %v2626_v43, %v2626_v43 }
 0xc1c   :  { %v654_v49 = vadd.f32 %v653_v45, %v652_v44  ;;  %v1399_v5 = vsel %vm85_vm0, %v1395_v47, 0.0 }
 0xc1d   :  { %v793_v54 = vadd.f32 %v792_v63, %v791_v46  ;;  %v956_v3 = vpop.xlane.xlu0 %955  ;;  %1400 = vadd.xlane.f32.xlu0 %v1399_v5  ;;  %v1396_v11 = vsel %vm85_vm0, %v1394_v48, 0.0 }
 0xc1e   :  { %v655_v17 = vrot.slane %v654_v49, 2  ;;  %v957_v55 = vrot.slane %v956_v3, 4  ;;  %1397 = vadd.xlane.f32.xlu1 %v1396_v11  ;;  %v1111_v56 = vpop.xlane.xlu1 %1110 }
 0xc1f   :  { %v794_v57 = vrot.slane %v793_v54, 2  ;;  %v1112_v58 = vrot.slane %v1111_v56, 4 }
 0xc20   :  { %v958_v21 = vadd.f32 %v957_v55, %v956_v3  ;;  %v656_v40 = vadd.f32 %v655_v17, %v654_v49 }
 0xc21   :  { %v1113_v22 = vadd.f32 %v1112_v58, %v1111_v56  ;;  %v1447_v41 = vpop.xlane.xlu0 %1446  ;;  %v795_v59 = vadd.f32 %v794_v57, %v793_v54 }
 0xc22   :  { %v959_v35 = vrot.slane %v958_v21, 2  ;;  %v1448_v50 = vrot.slane %v1447_v41, 4  ;;  %v657_v36 = vrot.slane %v656_v40, 1 }
 0xc23   :  { %v1114_v53 = vrot.slane %v1113_v22, 2  ;;  %v796_v60 = vrot.slane %v795_v59, 1 }
 0xc24   :  { %v1449_v61 = vadd.f32 %v1448_v50, %v1447_v41  ;;  %v658_v62 = vadd.f32 %v657_v36, %v656_v40  ;;  %v960_v0 = vadd.f32 %v959_v35, %v958_v21 }
 0xc25   :  { %v797_v1 = vadd.f32 %v796_v60, %v795_v59  ;;  %v1115_v2 = vadd.f32 %v1114_v53, %v1113_v22 }
 0xc26   :  { %v1450_v39 = vrot.slane %v1449_v61, 2  ;;  %1946 = vpush %v658_v62  ;;  %v961_v4 = vrot.slane %v960_v0, 1 }
 0xc27   :  { %1948 = vpush %v797_v1  ;;  %v1116_v6 = vrot.slane %v1115_v2, 1 }
 0xc28   :  { %v962_v7 = vadd.f32 %v961_v4, %v960_v0  ;;  %v1451_v8 = vadd.f32 %v1450_v39, %v1449_v61 }
 0xc29   :  { %v1117_v9 = vadd.f32 %v1116_v6, %v1115_v2 }
 0xc2a   :  { %1950 = vpush %v962_v7  ;;  %v1452_v10 = vrot.slane %v1451_v8, 1 }
 0xc2b   :  { %1952 = vpush %v1117_v9 }
 0xc2c   :  { %v1453_v12 = vadd.f32 %v1452_v10, %v1451_v8 }
 0xc2e   :  { %1954 = vpush %v1453_v12 }
 0xc2f   :  { %2052 = shalt.err (!%p2049_p12)
}
 0xc30   :  { %s2053_s0 = scalar_lea.hbm %s2739_s12, 256 }
 0xc31   :  { %p2054_p13 = scmp.ne.s32.totalorder %s2739_s12, %s2053_s0  ;;  %p2057_p0 = scmp.lt.u32.totalorder %s2053_s0, %s2739_s12 }
 0xc33   :  { %p2059_p1 = pnand %p2057_p0, %p2054_p13 }
 0xc35   :  { %2062 = shalt.err (!%p2059_p1)
}
 0xc36   :  { %1483 = dma.vmem_to_hbm [thread:$0]  %s1478_s2, 256, %s2739_s12, [#allocation11], %s2160_s28, %s2160_s28, %s2161_s29  }
 0xc37   :  { %s2170_s24 = smov [#allocation12]  }
 0xc38   :  { %s1489_s25 = sshll.u32 %s2170_s24, 4  ;;  %s1490_s25 = int_to_ptr.vmem [resolvable:$true] %s1489_s25 }
 0xc39   :  { %s2063_s5 = scalar_lea.vmem %s1490_s25, 256  ;;  %p2068_p3 = scmp.lt.s32.totalorder %s1490_s25, %s1490_s25 }
 0xc3a   :  { %p2064_p2 = scmp.ne.s32.totalorder %s1490_s25, %s2063_s5  ;;  %p2069_p4 = scmp.lt.s32.totalorder %s2063_s5, %s2063_s5 }
 0xc3c   :  { %p2070_p5 = por %p2069_p4, %p2068_p3 }
 0xc3e   :  { %p2071_p6 = pnand %p2070_p5, %p2064_p2 }
 0xc40   :  { %2074 = shalt.err (!%p2071_p6)
}
 0xc41   :  { %s2075_s26 = scalar_lea.hbm %s2740_s13, 256 }
 0xc42   :  { %p2076_p7 = scmp.ne.s32.totalorder %s2740_s13, %s2075_s26  ;;  %p2079_p8 = scmp.lt.u32.totalorder %s2075_s26, %s2740_s13 }
 0xc44   :  { %p2081_p9 = pnand %p2079_p8, %p2076_p7 }
 0xc46   :  { %2084 = shalt.err (!%p2081_p9)
}
 0xc47   :  { %1495 = dma.vmem_to_hbm [thread:$0]  %s1490_s25, 256, %s2740_s13, [#allocation11], %s2160_s28, %s2160_s28, %s2161_s29   ;;  %v1135_v15 = vld [vmem:[#allocation2] sm:$0x1]  ;;  %v1139_v20 = vld [vmem:[#allocation3] sm:$0x1] }
 0xc48   :  { %v1433_v29 = vstv %s366_s21  ;;  %s2171_s13 = smov [#allocation13]   ;;  %s2172_s3 = smov [#allocation15]  }
 0xc49   :  { %s1502_s20 = sshll.u32 %s2171_s13, 4  ;;  %s1512_s22 = sshll.u32 %s2172_s3, 4  ;;  %s1503_s20 = int_to_ptr.vmem [resolvable:$true] %s1502_s20  ;;  %s2668_s22 = int_to_ptr.vmem [resolvable:$true] %s1512_s22 }
 0xc4a   :  { %s2085_s23 = scalar_lea.vmem %s1503_s20, 16  ;;  %s2089_s4 = scalar_lea.vmem %s1503_s20, 32 }
 0xc4b   :  { %p2086_p10 = scmp.ne.s32.totalorder %s1503_s20, %s2085_s23  ;;  %p2090_p11 = scmp.lt.s32.totalorder %s1503_s20, %s1503_s20 }
 0xc4c   :  { %p2091_p12 = scmp.lt.s32.totalorder %s2089_s4, %s2085_s23 }
 0xc4e   :  { %p2092_p13 = por %p2091_p12, %p2090_p11 }
 0xc50   :  { %p2093_p0 = pnand %p2092_p13, %p2086_p10 }
 0xc57   :  { %s1947_s10 = spop %1946 }
 0xc58   :  { %s1949_s16 = spop %1948  ;;  %v660_v13 = vstv %s1947_s10 }
 0xc59   :  { %v799_v16 = vstv %s1949_s16 }
 0xc5b   :  { %s1951_s0 = spop %1950 }
 0xc5c   :  { %v964_v14 = vstv %s1951_s0  ;;  %s1953_s17 = spop %1952 }
 0xc5d   :  { %v965_v18 = vadd.f32 %v964_v14, %v660_v13  ;;  %v1119_v19 = vstv %s1953_s17 }
 0xc5e   :  { %v1120_v23 = vadd.f32 %v1119_v19, %v799_v16 }
 0xc5f   :  { %v1136_v24 = vadd.f32 %v1135_v15, %v965_v18  ;;  %s1955_s18 = spop %1954 }
 0xc60   :  { %v1140_v25 = vadd.f32 %v1139_v20, %v1120_v23  ;;  %v1455_v51 = vstv %s1955_s18 }
 0xc61   :  { %1138 = vst.msk [vmem:[#allocation2] sm:$0x1] %vm65_vm5, %v1136_v24  ;;  %v1456_v26 = vsub.f32 0.0, %v1455_v51 }
 0xc62   :  { %1141 = vst.msk [vmem:[#allocation3] sm:$0x1] %vm65_vm5, %v1140_v25 }
 0xc63   :  { %v1457_v28 = vmul.f32 1.442695, %v1456_v26 }
 0xc65   :  { %2013 = vpow2.f32 %v1457_v28 }
 0xc68   :  { %v1431_v52 = vld [vmem:[#allocation2] sm:$0x1] }
 0xc69   :  { %v1432_v30 = vld [vmem:[#allocation3] sm:$0x1] }
 0xc6a   :  { %v1434_v31 = vmul.f32 %v1433_v29, %v1432_v30 }
 0xc6c   :  { %v1435_v32 = vadd.f32 %v1434_v31, %v1431_v52 }
 0xc6e   :  { %v1437_v33 = vmul.f32 0.5, %v1435_v32 }
 0xc6f   :  { %v2014_v34 = vpop.eup %2013 }
 0xc70   :  { %1459 = vst.msk [vmem:[#allocation15] sm:$0x1] %vm65_vm5, %v2014_v34  ;;  %1438 = vst.msk [vmem:[#allocation13] sm:$0x1] %vm65_vm5, %v1437_v33 }
 0xc71   :  { %2096 = shalt.err (!%p2093_p0)
}
 0xc72   :  { %s2097_s25 = scalar_lea.hbm %s2741_s14, 16 }
 0xc73   :  { %p2098_p1 = scmp.ne.s32.totalorder %s2741_s14, %s2097_s25  ;;  %p2101_p2 = scmp.lt.u32.totalorder %s2097_s25, %s2741_s14 }
 0xc75   :  { %p2103_p3 = pnand %p2101_p2, %p2098_p1 }
 0xc77   :  { %2106 = shalt.err (!%p2103_p3)
}
 0xc78   :  { %1505 = dma.vmem_to_hbm [thread:$0]  %s1503_s20, 16, %s2741_s14, [#allocation14]  }
 0xc79   :  { %s2107_s6 = scalar_lea.vmem %s2668_s22, 16  ;;  %s2111_s12 = scalar_lea.vmem %s2668_s22, 32 }
 0xc7a   :  { %p2108_p4 = scmp.ne.s32.totalorder %s2668_s22, %s2107_s6  ;;  %p2112_p5 = scmp.lt.s32.totalorder %s2668_s22, %s2668_s22 }
 0xc7b   :  { %p2113_p6 = scmp.lt.s32.totalorder %s2111_s12, %s2107_s6 }
 0xc7d   :  { %p2114_p7 = por %p2113_p6, %p2112_p5 }
 0xc7f   :  { %p2115_p8 = pnand %p2114_p7, %p2108_p4 }
 0xc81   :  { %2118 = shalt.err (!%p2115_p8)
}
 0xc82   :  { %s2119_s10 = scalar_lea.hbm %s2742_s15, 16 }
 0xc83   :  { %p2120_p9 = scmp.ne.s32.totalorder %s2742_s15, %s2119_s10  ;;  %p2123_p10 = scmp.lt.u32.totalorder %s2119_s10, %s2742_s15 }
 0xc85   :  { %p2125_p11 = pnand %p2123_p10, %p2120_p9 }
 0xc87   :  { %2128 = shalt.err (!%p2125_p11)
}
 0xc88   :  { %1515 = dma.vmem_to_hbm [thread:$0]  %s2668_s22, 16, %s2742_s15, [#allocation14]   ;;  %v1600_v63 = vld [vmem:[%s2734_s7 + $0x1] ss:$0 sm:$0xff] }
 0xc89   :  { %v1601_v54 = vld [vmem:[%s2735_s8 + $0x1] ss:$0 sm:$0xff]  ;;  %s2173_s22 = smov [#allocation9]  }
 0xc8a   :  { %s1465_s4 = sshll.u32 %s2173_s22, 4  ;;  %s1466_s4 = int_to_ptr.vmem [resolvable:$true] %s1465_s4 }
 0xc8b   :  { %s2129_s7 = scalar_lea.vmem %s1466_s4, 256  ;;  %p2134_p13 = scmp.lt.s32.totalorder %s1466_s4, %s1466_s4 }
 0xc8c   :  { %p2130_p12 = scmp.ne.s32.totalorder %s1466_s4, %s2129_s7  ;;  %p2135_p0 = scmp.lt.s32.totalorder %s2129_s7, %s2129_s7 }
 0xc8e   :  { %p2136_p1 = por %p2135_p0, %p2134_p13 }
 0xc90   :  { %p2137_p2 = pnand %p2136_p1, %p2130_p12 }
 0xcaa   :  { %v1401_v37 = vpop.xlane.xlu0 %1400 }
 0xcab   :  { %v1403_v38 = vmul.f32 0.03125, %v1401_v37  ;;  %v1398_v42 = vpop.xlane.xlu1 %1397 }
 0xcac   :  { %v1402_v44 = vmul.f32 0.03125, %v1398_v42 }
 0xcad   :  { %v1405_v45 = vadd.f32 1e-05, %v1403_v38 }
 0xcae   :  { %v1404_v46 = vadd.f32 1e-05, %v1402_v44 }
 0xcaf   :  { %2015 = vrsqrt.f32 %v1405_v45 }
 0xcb0   :  { %2017 = vrsqrt.f32 %v1404_v46 }
 0xcb9   :  { %v2016_v47 = vpop.eup %2015 }
 0xcba   :  { %v2018_v48 = vpop.eup %2017  ;;  %v1409_v49 = vmul.f32 %v2016_v47, %v2624_v27 }
 0xcbb   :  { %v1408_v5 = vmul.f32 %v2018_v48, %v2626_v43 }
 0xcbc   :  { %v1417_v3 = vmul.f32 %v1600_v63, %v1409_v49 }
 0xcbd   :  { %v1416_v11 = vmul.f32 %v1600_v63, %v1408_v5 }
 0xcbe   :  { %v1425_v17 = vadd.f32 %v1601_v54, %v1417_v3 }
 0xcbf   :  { %v1424_v55 = vadd.f32 %v1601_v54, %v1416_v11 }
 0xcc0   :  { %1427 = vst.msk [vmem:[#allocation9 + $0x8] sm:$0xff] %vm85_vm0, %v1425_v17 }
 0xcc1   :  { %1426 = vst.msk [vmem:[#allocation9] sm:$0xff] %vm85_vm0, %v1424_v55 }
 0xcc2   :  { %2140 = shalt.err (!%p2137_p2)
}
 0xcc3   :  { %s2141_s24 = scalar_lea.hbm %s2738_s11, 256 }
 0xcc4   :  { %p2142_p3 = scmp.ne.s32.totalorder %s2738_s11, %s2141_s24  ;;  %p2145_p4 = scmp.lt.u32.totalorder %s2141_s24, %s2738_s11 }
 0xcc6   :  { %p2147_p5 = pnand %p2145_p4, %p2142_p3 }
 0xcc8   :  { %2150 = shalt.err (!%p2147_p5)
}
 0xcc9   :  { %1471 = dma.vmem_to_hbm [thread:$0]  %s1466_s4, 256, %s2738_s11, [#allocation8], %s2160_s28, %s2160_s28, %s2161_s29  }
 0xcca   :  { %2153 = dma.done.wait [#allocation8], 256  }
 0xccb   :  { %2154 = vsyncadd [#allocation8], 4294967040 }
 0xccc   :  { %2155 = dma.done.wait [#allocation11], 512  }
 0xccd   :  { %2156 = vsyncadd [#allocation11], 4294966784 }
 0xcce   :  { %2157 = dma.done.wait [#allocation14], 32  }
 0xccf   :  { %2158 = vsyncadd [#allocation14], 4294967264 }
 0xcd0   :  { %1531 = vsyncpa [#allocation7], 1 }
 0xcd1   :  { %1532 = vsyncpa [#allocation8], 1 }
 0xcd2   :  { %1533 = vsyncpa [#allocation11], 1 }
 0xcd3   :  { %1534 = vsyncpa [#allocation14], 1 }

</bundles_post_ra>
